<compile_context>
chip_gen: v5e
topology: v5e:2x2
jax: 0.10.0
libtpu: 0.0.40
codegen_flags: <defaults>
</compile_context>

<pallas_src>
import math
import functools

import jax
import jax.numpy as jnp
from jax.experimental import pallas as pl
from jax.experimental.pallas import tpu as pltpu


# ----------------------------------------------------------------------------
# generation-aware VMEM budget
# ----------------------------------------------------------------------------
def _vmem_limit_bytes():
    cap = 64 * 1024 * 1024          # conservative default (v7x per-core VMEM)
    try:
        info = pltpu.get_tpu_info()
        cap = int(getattr(info, "vmem_capacity_bytes", cap))
    except Exception:
        pass
    # leave ~16 MiB headroom for compiler scratch / double buffers, cap at 100 MiB
    return max(32 * 1024 * 1024, min(100 * 1024 * 1024, cap - 16 * 1024 * 1024))


_VMEM_LIMIT = _vmem_limit_bytes()


# ----------------------------------------------------------------------------
# small helpers
# ----------------------------------------------------------------------------
def _round_up(x, m):
    return ((x + m - 1) // m) * m


def _pick_batch_block(n, s, e, nhead, nhid, vmem_budget):
    """Pick a batch block size (divisor of n).

    * keeps >= 2 grid steps when n >= 2 (v7x megacore sharding),
    * keeps the rough per-block live set inside ~half the VMEM budget,
    * otherwise grows the block toward ~256 rows (MXU-friendly M).
    """
    per_seq = s * e * 48 + 2 * s * s * 4 + s * nhid * 8   # rough bytes / sequence
    target_rows = 256
    best = 1
    for nb in range(1, n + 1):
        if n % nb:
            continue
        if n >= 2 and n // nb < 2:          # keep at least 2 grid steps
            continue
        if nb * per_seq > vmem_budget * 0.5:
            continue
        best = nb
        if nb * s >= target_rows:
            break
    return best


def _pick_row_tile(m):
    for t in (512, 256, 128, 64, 32, 16, 8):
        if m % t == 0:
            return t
    return m


def _pick_col_tile(v):
    for t in (512, 256, 128):
        if v % t == 0:
            return t
    return v


# ----------------------------------------------------------------------------
# Kernel 1: one TransformerEncoderLayer (post-norm, ReLU), batch-block grid.
#           Fused QKV / fused out-projection; per-head attention math only.
#           The first layer additionally fuses sqrt(E)*emb + positional enc.
# ----------------------------------------------------------------------------
def _encoder_layer_kernel(*refs, nhead, embed_scale, has_pe):
    f32, bf16 = jnp.float32, jnp.bfloat16
    if has_pe:
        (x_ref, pe_ref, wqkv_ref, bqkv_ref, wo_ref, bo_ref,
         ln1w_ref, ln1b_ref, w1_ref, b1_ref, w2_ref, b2_ref,
         ln2w_ref, ln2b_ref, out_ref) = refs
    else:
        pe_ref = None
        (x_ref, wqkv_ref, bqkv_ref, wo_ref, bo_ref,
         ln1w_ref, ln1b_ref, w1_ref, b1_ref, w2_ref, b2_ref,
         ln2w_ref, ln2b_ref, out_ref) = refs

    x = x_ref[...]                                  # (nb, S, E) bf16
    nb, s_len, e = x.shape
    hd = e // nhead
    m_rows = nb * s_len
    scale = 1.0 / math.sqrt(hd)

    if has_pe:
        # fused: emb * sqrt(E) + positional encoding (f32 math)
        x_f32 = x.astype(f32) * embed_scale + pe_ref[...][None]
    else:
        x_f32 = x.astype(f32)

    x2 = x_f32.astype(bf16).reshape(m_rows, e)

    # --- fused QKV projection: one lane-dense (M, E) @ (E, 3E) matmul ---
    qkv = jnp.dot(x2, wqkv_ref[...], preferred_element_type=f32) + bqkv_ref[...]
    qkv = qkv.reshape(nb, s_len, 3 * e)             # [q | k | v], head-major inside

    # causal additive mask, built once
    row = jax.lax.broadcasted_iota(jnp.int32, (s_len, s_len), 0)
    col = jax.lax.broadcasted_iota(jnp.int32, (s_len, s_len), 1)
    mask = jnp.where(row >= col, 0.0, -jnp.inf).astype(f32)

    # --- per-head attention (scores are inherently hd-deep contractions) ---
    ctx_heads = []
    for h in range(nhead):
        q_h = qkv[:, :, h * hd:(h + 1) * hd] * scale          # fold 1/sqrt(hd) into q
        k_h = qkv[:, :, e + h * hd: e + (h + 1) * hd]
        v_h = qkv[:, :, 2 * e + h * hd: 2 * e + (h + 1) * hd]

        s_h = jnp.einsum('bqd,bkd->bqk', q_h.astype(bf16), k_h.astype(bf16),
                         preferred_element_type=f32) + mask[None]
        m_h = jnp.max(s_h, axis=-1, keepdims=True)
        p_h = jnp.exp(s_h - m_h)
        denom = jnp.sum(p_h, axis=-1, keepdims=True)
        p_h = p_h * pl.reciprocal(denom, approx=True)          # softmax (f32)

        ctx_h = jnp.einsum('bqk,bkd->bqd', p_h.astype(bf16), v_h.astype(bf16),
                           preferred_element_type=f32)          # (nb, S, hd)
        ctx_heads.append(ctx_h.astype(bf16))

    # head-concat along lanes, then one full-width output projection
    ctx = jnp.concatenate(ctx_heads, axis=-1).reshape(m_rows, e)
    attn = jnp.dot(ctx, wo_ref[...], preferred_element_type=f32) + bo_ref[...]
    attn = attn.reshape(nb, s_len, e)

    def layer_norm(hval, w_ref, b_ref):
        mu = jnp.mean(hval, axis=-1, keepdims=True)
        var = jnp.mean((hval - mu) ** 2, axis=-1, keepdims=True)
        return (hval - mu) * jax.lax.rsqrt(var + 1e-5) * w_ref[...][None] + b_ref[...][None]

    h1 = layer_norm(x_f32 + attn, ln1w_ref, ln1b_ref)           # (nb, S, E) f32

    # --- feed-forward (ReLU), bf16 matmuls / f32 accumulation ---
    hf = h1.reshape(m_rows, e).astype(bf16)
    ff1 = jnp.dot(hf, w1_ref[...], preferred_element_type=f32) + b1_ref[...]
    ff1 = jnp.maximum(ff1, 0.0)
    ff2 = jnp.dot(ff1.astype(bf16), w2_ref[...], preferred_element_type=f32) + b2_ref[...]
    ffn = ff2.reshape(nb, s_len, e)

    out = layer_norm(h1 + ffn, ln2w_ref, ln2b_ref)
    out_ref[...] = out.astype(out_ref.dtype)


def encoder_layer(x, lp, nhead, pe=None, embed_scale=1.0):
    n, s_len, e = x.shape
    nhid = lp["w1"].shape[1]
    nb = _pick_batch_block(n, s_len, e, nhead, nhid, _VMEM_LIMIT)

    weights = (lp["wqkv"], lp["bqkv"], lp["wo"], lp["bo"],
               lp["ln1_w"], lp["ln1_b"], lp["w1"], lp["b1"],
               lp["w2"], lp["b2"], lp["ln2_w"], lp["ln2_b"])

    # whole-array VMEM operands: weights/PE are resident once (single-buffered),
    # not re-DMA'd / double-buffered per grid step.
    vmem_spec = pl.BlockSpec(memory_space=pltpu.MemorySpace.VMEM)

    has_pe = pe is not None
    in_specs = [pl.BlockSpec((nb, s_len, e), lambda i: (i, 0, 0))]
    args = [x]
    if has_pe:
        in_specs.append(vmem_spec)
        args.append(pe)
    in_specs += [vmem_spec] * len(weights)
    args += list(weights)

    return pl.pallas_call(
        functools.partial(_encoder_layer_kernel, nhead=nhead,
                          embed_scale=float(embed_scale), has_pe=has_pe),
        out_shape=jax.ShapeDtypeStruct((n, s_len, e), jnp.bfloat16),
        grid=(n // nb,),
        in_specs=in_specs,
        out_specs=pl.BlockSpec((nb, s_len, e), lambda i: (i, 0, 0)),
        compiler_params=pltpu.CompilerParams(
            dimension_semantics=("parallel",),
            vmem_limit_bytes=_VMEM_LIMIT),
    )(*args)


# ----------------------------------------------------------------------------
# Kernel 2: tiled vocab projection  (rows, E) @ (E, Vpad) + bias
# ----------------------------------------------------------------------------
def _decoder_kernel(x_ref, w_ref, b_ref, out_ref):
    out_ref[...] = (jnp.dot(x_ref[...], w_ref[...],
                            preferred_element_type=jnp.float32) + b_ref[...])


def decoder_linear(x, w, b):
    # TODO(synk): add a K grid axis + VMEM accumulator if ninp exceeds a few K.
    m, e = x.shape
    vpad = w.shape[1]
    tm = _pick_row_tile(m)
    tn = _pick_col_tile(vpad)

    # keep the double-buffered tile working set within ~half the VMEM budget
    def tile_bytes(tm_, tn_):
        return 2 * (tm_ * e * 2 + e * tn_ * 2 + tn_ * 4) + 2 * tm_ * tn_ * 4

    while tm > 8 and tile_bytes(tm, tn) > _VMEM_LIMIT // 2 and m % (tm // 2) == 0:
        tm //= 2

    return pl.pallas_call(
        _decoder_kernel,
        out_shape=jax.ShapeDtypeStruct((m, vpad), jnp.float32),
        grid=(m // tm, vpad // tn),
        in_specs=[pl.BlockSpec((tm, e), lambda i, j: (i, 0)),
                  pl.BlockSpec((e, tn), lambda i, j: (0, j)),
                  pl.BlockSpec((1, tn), lambda i, j: (0, j))],
        out_specs=pl.BlockSpec((tm, tn), lambda i, j: (i, j)),
        compiler_params=pltpu.CompilerParams(
            dimension_semantics=("parallel", "parallel"),
            vmem_limit_bytes=_VMEM_LIMIT),
    )(x, w, b)


# ----------------------------------------------------------------------------
# Model setup (deterministic synthetic parameters) and forward pass
# ----------------------------------------------------------------------------
def make_positional_encoding(max_len, d_model):
    position = jnp.arange(max_len, dtype=jnp.float32)[:, None]
    div_term = jnp.exp(jnp.arange(0, d_model, 2, dtype=jnp.float32)
                       * (-math.log(10000.0) / d_model))
    pe = jnp.zeros((max_len, d_model), dtype=jnp.float32)
    pe = pe.at[:, 0::2].set(jnp.sin(position * div_term))
    pe = pe.at[:, 1::2].set(jnp.cos(position * div_term))
    return pe                                   # (max_len, E)


def init_params(key, ntoken, ninp, nhead, nhid, nlayers):
    vpad = _round_up(ntoken, 128)

    def unif(k, shape, r=0.1, dtype=jnp.float32):
        return jax.random.uniform(k, shape, jnp.float32, -r, r).astype(dtype)

    keys = jax.random.split(key, 2 + nlayers)
    dec_w = unif(keys[1], (ntoken, ninp)).T                     # (E, ntoken)
    dec_w = jnp.pad(dec_w, ((0, 0), (0, vpad - ntoken))).astype(jnp.bfloat16)

    params = {
        "emb_w": unif(keys[0], (ntoken, ninp), dtype=jnp.bfloat16),   # bf16 gather table
        "dec_w": dec_w,                                               # (E, Vpad) bf16
        "dec_b": jnp.zeros((1, vpad), jnp.float32),
        "layers": [],
    }
    for l in range(nlayers):
        lk = jax.random.split(keys[2 + l], 4)
        params["layers"].append({
            # fused in-projection: y = x @ wqkv + bqkv, columns = [q | k | v],
            # head-major within each E block (matches in_proj_weight.T).
            "wqkv": unif(lk[0], (ninp, 3 * ninp), dtype=jnp.bfloat16),
            "bqkv": jnp.zeros((1, 3 * ninp), jnp.float32),
            # fused output projection on the head-concatenated context.
            "wo": unif(lk[1], (ninp, ninp), dtype=jnp.bfloat16),
            "bo": jnp.zeros((1, ninp), jnp.float32),
            "ln1_w": jnp.ones((1, ninp), jnp.float32),
            "ln1_b": jnp.zeros((1, ninp), jnp.float32),
            "w1": unif(lk[2], (ninp, nhid), dtype=jnp.bfloat16),
            "b1": jnp.zeros((1, nhid), jnp.float32),
            "w2": unif(lk[3], (nhid, ninp), dtype=jnp.bfloat16),
            "b2": jnp.zeros((1, ninp), jnp.float32),
            "ln2_w": jnp.ones((1, ninp), jnp.float32),
            "ln2_b": jnp.zeros((1, ninp), jnp.float32),
        })
    return params


def transformer_forward(src, params, pe_table, *, ninp, nhead):
    """src: (S, N) int32 token ids -> logits (S, N, ntoken) (PyTorch layout)."""
    s_len, n = src.shape
    ntoken = params["emb_w"].shape[0]

    # Embedding lookup: data-dependent gather stays in plain JAX (no clean
    # Pallas gather); the sqrt(E)-scale + positional-encoding add is fused into
    # the first encoder-layer kernel (no standalone memory-bound pass).
    tok = src.T                                     # (N, S) tiny int transpose
    emb = jnp.take(params["emb_w"], tok, axis=0)    # (N, S, E) bf16

    # encoder stack, batch-major (N, S, E) throughout (no HBM transposes)
    x = emb
    for li, lp in enumerate(params["layers"]):
        if li == 0:
            x = encoder_layer(x, lp, nhead, pe=pe_table[:s_len],
                              embed_scale=math.sqrt(ninp))
        else:
            x = encoder_layer(x, lp, nhead)

    # tiled vocab projection (Pallas), vocab padded to a multiple of 128.
    # Final logits kept f32 for output fidelity (bf16 writeback is an option
    # if the vocab projection ever becomes write-bandwidth bound).
    logits = decoder_linear(x.reshape(n * s_len, ninp),
                            params["dec_w"], params["dec_b"])
    logits = logits[:, :ntoken].reshape(n, s_len, ntoken)
    return jnp.transpose(logits, (1, 0, 2))         # back to PyTorch (S, N, V)


if __name__ == "__main__":
    # Small deterministic configuration
    ntoken, ninp, nhead, nhid, nlayers = 50, 32, 4, 64, 2
    S, N = 8, 2                                     # seq_len, batch

    key = jax.random.PRNGKey(0)
    k_par, k_src = jax.random.split(key)
    params = init_params(k_par, ntoken, ninp, nhead, nhid, nlayers)
    pe_table = make_positional_encoding(512, ninp)

    src = jax.random.randint(k_src, (S, N), 0, ntoken, dtype=jnp.int32)

    fwd = jax.jit(functools.partial(transformer_forward, ninp=ninp, nhead=nhead))
    out = jax.block_until_ready(fwd(src, params, pe_table))

    assert out.shape == (S, N, ntoken)
    assert bool(jnp.all(jnp.isfinite(out)))
    print("KERNEL_OK")
</pallas_src>

<mosaic_0001>
module attributes {stable_mosaic.version = 11 : i64} {
  func.func @_decoder_kernel(%arg0: i32, %arg1: i32, %arg2: memref<16x32xbf16, #tpu.memory_space<vmem>>, %arg3: memref<32x128xbf16, #tpu.memory_space<vmem>>, %arg4: memref<1x128xf32, #tpu.memory_space<vmem>>, %arg5: memref<16x128xf32, #tpu.memory_space<vmem>>) attributes {dimension_semantics = [#tpu.dimension_semantics<parallel>, #tpu.dimension_semantics<parallel>], iteration_bounds = array<i64: 1, 1>, scalar_prefetch = 0 : i64, scratch_operands = 0 : i64, tpu.core_type = #tpu.core_type<tc>, window_params = [{transform_indices = @transform_0, window_bounds = array<i64: 16, 32>}, {transform_indices = @transform_1, window_bounds = array<i64: 32, 128>}, {transform_indices = @transform_2, window_bounds = array<i64: 1, 128>}, {transform_indices = @transform_3, window_bounds = array<i64: 16, 128>}]} {
    %c0 = arith.constant 0 : index
    %c0_0 = arith.constant 0 : index
    %0 = vector.load %arg2[%c0, %c0_0] : memref<16x32xbf16, #tpu.memory_space<vmem>>, vector<16x32xbf16>
    %c0_1 = arith.constant 0 : index
    %c0_2 = arith.constant 0 : index
    %1 = vector.load %arg3[%c0_1, %c0_2] : memref<32x128xbf16, #tpu.memory_space<vmem>>, vector<32x128xbf16>
    %cst = arith.constant dense<0.000000e+00> : vector<16x128xf32>
    %2 = tpu.matmul %0, %1, %cst {dimension_numbers = #tpu.dot_dimension_numbers<[1], [0], [0], [1], [0, 0, 1, 1], [], []>} : vector<16x32xbf16>, vector<32x128xbf16>, vector<16x128xf32> -> vector<16x128xf32>
    %c0_3 = arith.constant 0 : index
    %c0_4 = arith.constant 0 : index
    %3 = vector.load %arg4[%c0_3, %c0_4] : memref<1x128xf32, #tpu.memory_space<vmem>>, vector<1x128xf32>
    %4 = vector.broadcast %3 : vector<1x128xf32> to vector<16x128xf32>
    %5 = arith.addf %2, %4 : vector<16x128xf32>
    %c0_5 = arith.constant 0 : index
    %c0_6 = arith.constant 0 : index
    %6 = vector.load %arg5[%c0_5, %c0_6] : memref<16x128xf32, #tpu.memory_space<vmem>>, vector<16x128xf32>
    tpu.vector_store %arg5[%c0_5, %c0_6], %5 {strides = array<i32>} : memref<16x128xf32, #tpu.memory_space<vmem>>, vector<16x128xf32>,
    return
  }
  func.func @transform_0(%arg0: i32, %arg1: i32) -> (i32, i32) {
    %c0_i32 = arith.constant 0 : i32
    %c0_i32_0 = arith.constant 0 : i32
    return %arg0, %c0_i32 : i32, i32
  }
  func.func @transform_1(%arg0: i32, %arg1: i32) -> (i32, i32) {
    %c0_i32 = arith.constant 0 : i32
    %c0_i32_0 = arith.constant 0 : i32
    return %c0_i32, %arg1 : i32, i32
  }
  func.func @transform_2(%arg0: i32, %arg1: i32) -> (i32, i32) {
    %c0_i32 = arith.constant 0 : i32
    %c0_i32_0 = arith.constant 0 : i32
    return %c0_i32, %arg1 : i32, i32
  }
  func.func @transform_3(%arg0: i32, %arg1: i32) -> (i32, i32) {
    %c0_i32 = arith.constant 0 : i32
    return %arg0, %arg1 : i32, i32
  }
}

module attributes {stable_mosaic.version = 11 : i64} {
  func.func @_encoder_layer_kernel(%arg0: i32, %arg1: memref<1x8x32xbf16, #tpu.memory_space<vmem>>, %arg2: memref<8x32xf32, #tpu.memory_space<vmem>>, %arg3: memref<32x96xbf16, #tpu.memory_space<vmem>>, %arg4: memref<1x96xf32, #tpu.memory_space<vmem>>, %arg5: memref<32x32xbf16, #tpu.memory_space<vmem>>, %arg6: memref<1x32xf32, #tpu.memory_space<vmem>>, %arg7: memref<1x32xf32, #tpu.memory_space<vmem>>, %arg8: memref<1x32xf32, #tpu.memory_space<vmem>>, %arg9: memref<32x64xbf16, #tpu.memory_space<vmem>>, %arg10: memref<1x64xf32, #tpu.memory_space<vmem>>, %arg11: memref<64x32xbf16, #tpu.memory_space<vmem>>, %arg12: memref<1x32xf32, #tpu.memory_space<vmem>>, %arg13: memref<1x32xf32, #tpu.memory_space<vmem>>, %arg14: memref<1x32xf32, #tpu.memory_space<vmem>>, %arg15: memref<1x8x32xbf16, #tpu.memory_space<vmem>>) attributes {dimension_semantics = [#tpu.dimension_semantics<parallel>], iteration_bounds = array<i64: 2>, scalar_prefetch = 0 : i64, scratch_operands = 0 : i64, tpu.core_type = #tpu.core_type<tc>, window_params = [{transform_indices = @transform_0, window_bounds = array<i64: 1, 8, 32>}, {pipeline_mode = #tpu.pipeline_mode<synchronous>, transform_indices = @transform_1, window_bounds = array<i64: 8, 32>}, {pipeline_mode = #tpu.pipeline_mode<synchronous>, transform_indices = @transform_2, window_bounds = array<i64: 32, 96>}, {pipeline_mode = #tpu.pipeline_mode<synchronous>, transform_indices = @transform_3, window_bounds = array<i64: 1, 96>}, {pipeline_mode = #tpu.pipeline_mode<synchronous>, transform_indices = @transform_4, window_bounds = array<i64: 32, 32>}, {pipeline_mode = #tpu.pipeline_mode<synchronous>, transform_indices = @transform_5, window_bounds = array<i64: 1, 32>}, {pipeline_mode = #tpu.pipeline_mode<synchronous>, transform_indices = @transform_6, window_bounds = array<i64: 1, 32>}, {pipeline_mode = #tpu.pipeline_mode<synchronous>, transform_indices = @transform_7, window_bounds = array<i64: 1, 32>}, {pipeline_mode = #tpu.pipeline_mode<synchronous>, transform_indices = @transform_8, window_bounds = array<i64: 32, 64>}, {pipeline_mode = #tpu.pipeline_mode<synchronous>, transform_indices = @transform_9, window_bounds = array<i64: 1, 64>}, {pipeline_mode = #tpu.pipeline_mode<synchronous>, transform_indices = @transform_10, window_bounds = array<i64: 64, 32>}, {pipeline_mode = #tpu.pipeline_mode<synchronous>, transform_indices = @transform_11, window_bounds = array<i64: 1, 32>}, {pipeline_mode = #tpu.pipeline_mode<synchronous>, transform_indices = @transform_12, window_bounds = array<i64: 1, 32>}, {pipeline_mode = #tpu.pipeline_mode<synchronous>, transform_indices = @transform_13, window_bounds = array<i64: 1, 32>}, {transform_indices = @transform_14, window_bounds = array<i64: 1, 8, 32>}]} {
    %c0 = arith.constant 0 : index
    %c0_0 = arith.constant 0 : index
    %c0_1 = arith.constant 0 : index
    %0 = vector.load %arg1[%c0, %c0_0, %c0_1] : memref<1x8x32xbf16, #tpu.memory_space<vmem>>, vector<1x8x32xbf16>
    %1 = arith.extf %0 : vector<1x8x32xbf16> to vector<1x8x32xf32>
    %cst = arith.constant 5.65685415 : f32
    %2 = vector.broadcast %cst : f32 to vector<1x8x32xf32>
    %3 = arith.mulf %1, %2 : vector<1x8x32xf32>
    %c0_2 = arith.constant 0 : index
    %c0_3 = arith.constant 0 : index
    %4 = vector.load %arg2[%c0_2, %c0_3] : memref<8x32xf32, #tpu.memory_space<vmem>>, vector<8x32xf32>
    %5 = vector.shape_cast %4 : vector<8x32xf32> to vector<1x8x32xf32>
    %6 = arith.addf %3, %5 : vector<1x8x32xf32>
    %7 = arith.truncf %6 : vector<1x8x32xf32> to vector<1x8x32xbf16>
    %8 = vector.shape_cast %7 : vector<1x8x32xbf16> to vector<8x32xbf16>
    %c0_4 = arith.constant 0 : index
    %c0_5 = arith.constant 0 : index
    %9 = vector.load %arg3[%c0_4, %c0_5] : memref<32x96xbf16, #tpu.memory_space<vmem>>, vector<32x96xbf16>
    %cst_6 = arith.constant dense<0.000000e+00> : vector<8x96xf32>
    %10 = tpu.matmul %8, %9, %cst_6 {dimension_numbers = #tpu.dot_dimension_numbers<[1], [0], [0], [1], [0, 0, 1, 1], [], []>} : vector<8x32xbf16>, vector<32x96xbf16>, vector<8x96xf32> -> vector<8x96xf32>
    %c0_7 = arith.constant 0 : index
    %c0_8 = arith.constant 0 : index
    %11 = vector.load %arg4[%c0_7, %c0_8] : memref<1x96xf32, #tpu.memory_space<vmem>>, vector<1x96xf32>
    %12 = vector.broadcast %11 : vector<1x96xf32> to vector<8x96xf32>
    %13 = arith.addf %10, %12 : vector<8x96xf32>
    %14 = vector.shape_cast %13 : vector<8x96xf32> to vector<1x8x96xf32>
    %15 = tpu.iota {dimensions = array<i32: 0>} : vector<8x8xi32>
    %16 = tpu.iota {dimensions = array<i32: 1>} : vector<8x8xi32>
    %17 = arith.cmpi sge, %15, %16 : vector<8x8xi32>
    %cst_9 = arith.constant 0.000000e+00 : f32
    %cst_10 = arith.constant 0xFF800000 : f32
    %18 = vector.broadcast %cst_9 : f32 to vector<8x8xf32>
    %19 = vector.broadcast %cst_10 : f32 to vector<8x8xf32>
    %20 = arith.select %17, %18, %19 : vector<8x8xi1>, vector<8x8xf32>
    %21 = vector.extract_strided_slice %14 {offsets = [0, 0, 0], sizes = [1, 8, 8], strides = [1, 1, 1]} : vector<1x8x96xf32> to vector<1x8x8xf32>
    %cst_11 = arith.constant 0.353553385 : f32
    %22 = vector.broadcast %cst_11 : f32 to vector<1x8x8xf32>
    %23 = arith.mulf %21, %22 : vector<1x8x8xf32>
    %24 = vector.extract_strided_slice %14 {offsets = [0, 0, 32], sizes = [1, 8, 8], strides = [1, 1, 1]} : vector<1x8x96xf32> to vector<1x8x8xf32>
    %25 = vector.extract_strided_slice %14 {offsets = [0, 0, 64], sizes = [1, 8, 8], strides = [1, 1, 1]} : vector<1x8x96xf32> to vector<1x8x8xf32>
    %26 = arith.truncf %23 : vector<1x8x8xf32> to vector<1x8x8xbf16>
    %27 = arith.truncf %24 : vector<1x8x8xf32> to vector<1x8x8xbf16>
    "tpu.trace_start"() <{level = 10 : i32, message = "bqd,bkd->bqk"}> : () -> ()
    %cst_12 = arith.constant dense<0.000000e+00> : vector<1x8x8xf32>
    %28 = tpu.matmul %26, %27, %cst_12 {dimension_numbers = #tpu.dot_dimension_numbers<[2], [2], [1], [1], [0, 0, 0, 1, 1, 1], [0], [0]>} : vector<1x8x8xbf16>, vector<1x8x8xbf16>, vector<1x8x8xf32> -> vector<1x8x8xf32>
    "tpu.trace_stop"() : () -> ()
    %29 = vector.shape_cast %20 : vector<8x8xf32> to vector<1x8x8xf32>
    %30 = arith.addf %28, %29 : vector<1x8x8xf32>
    %cst_13 = arith.constant dense<0xFF800000> : vector<1x8xf32>
    %31 = vector.multi_reduction <maximumf>, %30, %cst_13 [2] : vector<1x8x8xf32> to vector<1x8xf32>
    %32 = vector.shape_cast %31 : vector<1x8xf32> to vector<1x8x1xf32>
    %33 = vector.broadcast %32 : vector<1x8x1xf32> to vector<1x8x8xf32>
    %34 = arith.subf %30, %33 : vector<1x8x8xf32>
    %35 = math.exp %34 : vector<1x8x8xf32>
    %cst_14 = arith.constant dense<0.000000e+00> : vector<1x8xf32>
    %36 = vector.multi_reduction <add>, %35, %cst_14 [2] : vector<1x8x8xf32> to vector<1x8xf32>
    %37 = vector.shape_cast %36 : vector<1x8xf32> to vector<1x8x1xf32>
    %38 = tpu.reciprocal %37 {approx = true} : vector<1x8x1xf32> -> vector<1x8x1xf32>
    %39 = vector.broadcast %38 : vector<1x8x1xf32> to vector<1x8x8xf32>
    %40 = arith.mulf %35, %39 : vector<1x8x8xf32>
    %41 = arith.truncf %40 : vector<1x8x8xf32> to vector<1x8x8xbf16>
    %42 = arith.truncf %25 : vector<1x8x8xf32> to vector<1x8x8xbf16>
    "tpu.trace_start"() <{level = 10 : i32, message = "bqk,bkd->bqd"}> : () -> ()
    %cst_15 = arith.constant dense<0.000000e+00> : vector<1x8x8xf32>
    %43 = tpu.matmul %41, %42, %cst_15 {dimension_numbers = #tpu.dot_dimension_numbers<[2], [1], [1], [2], [0, 0, 0, 1, 1, 2], [0], [0]>} : vector<1x8x8xbf16>, vector<1x8x8xbf16>, vector<1x8x8xf32> -> vector<1x8x8xf32>
    "tpu.trace_stop"() : () -> ()
    %44 = arith.truncf %43 : vector<1x8x8xf32> to vector<1x8x8xbf16>
    %45 = vector.extract_strided_slice %14 {offsets = [0, 0, 8], sizes = [1, 8, 8], strides = [1, 1, 1]} : vector<1x8x96xf32> to vector<1x8x8xf32>
    %cst_16 = arith.constant 0.353553385 : f32
    %46 = vector.broadcast %cst_16 : f32 to vector<1x8x8xf32>
    %47 = arith.mulf %45, %46 : vector<1x8x8xf32>
    %48 = vector.extract_strided_slice %14 {offsets = [0, 0, 40], sizes = [1, 8, 8], strides = [1, 1, 1]} : vector<1x8x96xf32> to vector<1x8x8xf32>
    %49 = vector.extract_strided_slice %14 {offsets = [0, 0, 72], sizes = [1, 8, 8], strides = [1, 1, 1]} : vector<1x8x96xf32> to vector<1x8x8xf32>
    %50 = arith.truncf %47 : vector<1x8x8xf32> to vector<1x8x8xbf16>
    %51 = arith.truncf %48 : vector<1x8x8xf32> to vector<1x8x8xbf16>
    "tpu.trace_start"() <{level = 10 : i32, message = "bqd,bkd->bqk"}> : () -> ()
    %cst_17 = arith.constant dense<0.000000e+00> : vector<1x8x8xf32>
    %52 = tpu.matmul %50, %51, %cst_17 {dimension_numbers = #tpu.dot_dimension_numbers<[2], [2], [1], [1], [0, 0, 0, 1, 1, 1], [0], [0]>} : vector<1x8x8xbf16>, vector<1x8x8xbf16>, vector<1x8x8xf32> -> vector<1x8x8xf32>
    "tpu.trace_stop"() : () -> ()
    %53 = vector.shape_cast %20 : vector<8x8xf32> to vector<1x8x8xf32>
    %54 = arith.addf %52, %53 : vector<1x8x8xf32>
    %cst_18 = arith.constant dense<0xFF800000> : vector<1x8xf32>
    %55 = vector.multi_reduction <maximumf>, %54, %cst_18 [2] : vector<1x8x8xf32> to vector<1x8xf32>
    %56 = vector.shape_cast %55 : vector<1x8xf32> to vector<1x8x1xf32>
    %57 = vector.broadcast %56 : vector<1x8x1xf32> to vector<1x8x8xf32>
    %58 = arith.subf %54, %57 : vector<1x8x8xf32>
    %59 = math.exp %58 : vector<1x8x8xf32>
    %cst_19 = arith.constant dense<0.000000e+00> : vector<1x8xf32>
    %60 = vector.multi_reduction <add>, %59, %cst_19 [2] : vector<1x8x8xf32> to vector<1x8xf32>
    %61 = vector.shape_cast %60 : vector<1x8xf32> to vector<1x8x1xf32>
    %62 = tpu.reciprocal %61 {approx = true} : vector<1x8x1xf32> -> vector<1x8x1xf32>
    %63 = vector.broadcast %62 : vector<1x8x1xf32> to vector<1x8x8xf32>
    %64 = arith.mulf %59, %63 : vector<1x8x8xf32>
    %65 = arith.truncf %64 : vector<1x8x8xf32> to vector<1x8x8xbf16>
    %66 = arith.truncf %49 : vector<1x8x8xf32> to vector<1x8x8xbf16>
    "tpu.trace_start"() <{level = 10 : i32, message = "bqk,bkd->bqd"}> : () -> ()
    %cst_20 = arith.constant dense<0.000000e+00> : vector<1x8x8xf32>
    %67 = tpu.matmul %65, %66, %cst_20 {dimension_numbers = #tpu.dot_dimension_numbers<[2], [1], [1], [2], [0, 0, 0, 1, 1, 2], [0], [0]>} : vector<1x8x8xbf16>, vector<1x8x8xbf16>, vector<1x8x8xf32> -> vector<1x8x8xf32>
    "tpu.trace_stop"() : () -> ()
    %68 = arith.truncf %67 : vector<1x8x8xf32> to vector<1x8x8xbf16>
    %69 = vector.extract_strided_slice %14 {offsets = [0, 0, 16], sizes = [1, 8, 8], strides = [1, 1, 1]} : vector<1x8x96xf32> to vector<1x8x8xf32>
    %cst_21 = arith.constant 0.353553385 : f32
    %70 = vector.broadcast %cst_21 : f32 to vector<1x8x8xf32>
    %71 = arith.mulf %69, %70 : vector<1x8x8xf32>
    %72 = vector.extract_strided_slice %14 {offsets = [0, 0, 48], sizes = [1, 8, 8], strides = [1, 1, 1]} : vector<1x8x96xf32> to vector<1x8x8xf32>
    %73 = vector.extract_strided_slice %14 {offsets = [0, 0, 80], sizes = [1, 8, 8], strides = [1, 1, 1]} : vector<1x8x96xf32> to vector<1x8x8xf32>
    %74 = arith.truncf %71 : vector<1x8x8xf32> to vector<1x8x8xbf16>
    %75 = arith.truncf %72 : vector<1x8x8xf32> to vector<1x8x8xbf16>
    "tpu.trace_start"() <{level = 10 : i32, message = "bqd,bkd->bqk"}> : () -> ()
    %cst_22 = arith.constant dense<0.000000e+00> : vector<1x8x8xf32>
    %76 = tpu.matmul %74, %75, %cst_22 {dimension_numbers = #tpu.dot_dimension_numbers<[2], [2], [1], [1], [0, 0, 0, 1, 1, 1], [0], [0]>} : vector<1x8x8xbf16>, vector<1x8x8xbf16>, vector<1x8x8xf32> -> vector<1x8x8xf32>
    "tpu.trace_stop"() : () -> ()
    %77 = vector.shape_cast %20 : vector<8x8xf32> to vector<1x8x8xf32>
    %78 = arith.addf %76, %77 : vector<1x8x8xf32>
    %cst_23 = arith.constant dense<0xFF800000> : vector<1x8xf32>
    %79 = vector.multi_reduction <maximumf>, %78, %cst_23 [2] : vector<1x8x8xf32> to vector<1x8xf32>
    %80 = vector.shape_cast %79 : vector<1x8xf32> to vector<1x8x1xf32>
    %81 = vector.broadcast %80 : vector<1x8x1xf32> to vector<1x8x8xf32>
    %82 = arith.subf %78, %81 : vector<1x8x8xf32>
    %83 = math.exp %82 : vector<1x8x8xf32>
    %cst_24 = arith.constant dense<0.000000e+00> : vector<1x8xf32>
    %84 = vector.multi_reduction <add>, %83, %cst_24 [2] : vector<1x8x8xf32> to vector<1x8xf32>
    %85 = vector.shape_cast %84 : vector<1x8xf32> to vector<1x8x1xf32>
    %86 = tpu.reciprocal %85 {approx = true} : vector<1x8x1xf32> -> vector<1x8x1xf32>
    %87 = vector.broadcast %86 : vector<1x8x1xf32> to vector<1x8x8xf32>
    %88 = arith.mulf %83, %87 : vector<1x8x8xf32>
    %89 = arith.truncf %88 : vector<1x8x8xf32> to vector<1x8x8xbf16>
    %90 = arith.truncf %73 : vector<1x8x8xf32> to vector<1x8x8xbf16>
    "tpu.trace_start"() <{level = 10 : i32, message = "bqk,bkd->bqd"}> : () -> ()
    %cst_25 = arith.constant dense<0.000000e+00> : vector<1x8x8xf32>
    %91 = tpu.matmul %89, %90, %cst_25 {dimension_numbers = #tpu.dot_dimension_numbers<[2], [1], [1], [2], [0, 0, 0, 1, 1, 2], [0], [0]>} : vector<1x8x8xbf16>, vector<1x8x8xbf16>, vector<1x8x8xf32> -> vector<1x8x8xf32>
    "tpu.trace_stop"() : () -> ()
    %92 = arith.truncf %91 : vector<1x8x8xf32> to vector<1x8x8xbf16>
    %93 = vector.extract_strided_slice %14 {offsets = [0, 0, 24], sizes = [1, 8, 8], strides = [1, 1, 1]} : vector<1x8x96xf32> to vector<1x8x8xf32>
    %cst_26 = arith.constant 0.353553385 : f32
    %94 = vector.broadcast %cst_26 : f32 to vector<1x8x8xf32>
    %95 = arith.mulf %93, %94 : vector<1x8x8xf32>
    %96 = vector.extract_strided_slice %14 {offsets = [0, 0, 56], sizes = [1, 8, 8], strides = [1, 1, 1]} : vector<1x8x96xf32> to vector<1x8x8xf32>
    %97 = vector.extract_strided_slice %14 {offsets = [0, 0, 88], sizes = [1, 8, 8], strides = [1, 1, 1]} : vector<1x8x96xf32> to vector<1x8x8xf32>
    %98 = arith.truncf %95 : vector<1x8x8xf32> to vector<1x8x8xbf16>
    %99 = arith.truncf %96 : vector<1x8x8xf32> to vector<1x8x8xbf16>
    "tpu.trace_start"() <{level = 10 : i32, message = "bqd,bkd->bqk"}> : () -> ()
    %cst_27 = arith.constant dense<0.000000e+00> : vector<1x8x8xf32>
    %100 = tpu.matmul %98, %99, %cst_27 {dimension_numbers = #tpu.dot_dimension_numbers<[2], [2], [1], [1], [0, 0, 0, 1, 1, 1], [0], [0]>} : vector<1x8x8xbf16>, vector<1x8x8xbf16>, vector<1x8x8xf32> -> vector<1x8x8xf32>
    "tpu.trace_stop"() : () -> ()
    %101 = vector.shape_cast %20 : vector<8x8xf32> to vector<1x8x8xf32>
    %102 = arith.addf %100, %101 : vector<1x8x8xf32>
    %cst_28 = arith.constant dense<0xFF800000> : vector<1x8xf32>
    %103 = vector.multi_reduction <maximumf>, %102, %cst_28 [2] : vector<1x8x8xf32> to vector<1x8xf32>
    %104 = vector.shape_cast %103 : vector<1x8xf32> to vector<1x8x1xf32>
    %105 = vector.broadcast %104 : vector<1x8x1xf32> to vector<1x8x8xf32>
    %106 = arith.subf %102, %105 : vector<1x8x8xf32>
    %107 = math.exp %106 : vector<1x8x8xf32>
    %cst_29 = arith.constant dense<0.000000e+00> : vector<1x8xf32>
    %108 = vector.multi_reduction <add>, %107, %cst_29 [2] : vector<1x8x8xf32> to vector<1x8xf32>
    %109 = vector.shape_cast %108 : vector<1x8xf32> to vector<1x8x1xf32>
    %110 = tpu.reciprocal %109 {approx = true} : vector<1x8x1xf32> -> vector<1x8x1xf32>
    %111 = vector.broadcast %110 : vector<1x8x1xf32> to vector<1x8x8xf32>
    %112 = arith.mulf %107, %111 : vector<1x8x8xf32>
    %113 = arith.truncf %112 : vector<1x8x8xf32> to vector<1x8x8xbf16>
    %114 = arith.truncf %97 : vector<1x8x8xf32> to vector<1x8x8xbf16>
    "tpu.trace_start"() <{level = 10 : i32, message = "bqk,bkd->bqd"}> : () -> ()
    %cst_30 = arith.constant dense<0.000000e+00> : vector<1x8x8xf32>
    %115 = tpu.matmul %113, %114, %cst_30 {dimension_numbers = #tpu.dot_dimension_numbers<[2], [1], [1], [2], [0, 0, 0, 1, 1, 2], [0], [0]>} : vector<1x8x8xbf16>, vector<1x8x8xbf16>, vector<1x8x8xf32> -> vector<1x8x8xf32>
    "tpu.trace_stop"() : () -> ()
    %116 = arith.truncf %115 : vector<1x8x8xf32> to vector<1x8x8xbf16>
    %117 = tpu.concatenate %44, %68, %92, %116 in 2 : vector<1x8x8xbf16>, vector<1x8x8xbf16>, vector<1x8x8xbf16>, vector<1x8x8xbf16> -> vector<1x8x32xbf16>
    %118 = vector.shape_cast %117 : vector<1x8x32xbf16> to vector<8x32xbf16>
    %c0_31 = arith.constant 0 : index
    %c0_32 = arith.constant 0 : index
    %119 = vector.load %arg5[%c0_31, %c0_32] : memref<32x32xbf16, #tpu.memory_space<vmem>>, vector<32x32xbf16>
    %cst_33 = arith.constant dense<0.000000e+00> : vector<8x32xf32>
    %120 = tpu.matmul %118, %119, %cst_33 {dimension_numbers = #tpu.dot_dimension_numbers<[1], [0], [0], [1], [0, 0, 1, 1], [], []>} : vector<8x32xbf16>, vector<32x32xbf16>, vector<8x32xf32> -> vector<8x32xf32>
    %c0_34 = arith.constant 0 : index
    %c0_35 = arith.constant 0 : index
    %121 = vector.load %arg6[%c0_34, %c0_35] : memref<1x32xf32, #tpu.memory_space<vmem>>, vector<1x32xf32>
    %122 = vector.broadcast %121 : vector<1x32xf32> to vector<8x32xf32>
    %123 = arith.addf %120, %122 : vector<8x32xf32>
    %124 = vector.shape_cast %123 : vector<8x32xf32> to vector<1x8x32xf32>
    %125 = arith.addf %6, %124 : vector<1x8x32xf32>
    %cst_36 = arith.constant dense<0.000000e+00> : vector<1x8xf32>
    %126 = vector.multi_reduction <add>, %125, %cst_36 [2] : vector<1x8x32xf32> to vector<1x8xf32>
    %127 = vector.shape_cast %126 : vector<1x8xf32> to vector<1x8x1xf32>
    %cst_37 = arith.constant 3.200000e+01 : f32
    %128 = vector.broadcast %cst_37 : f32 to vector<1x8x1xf32>
    %129 = arith.divf %127, %128 : vector<1x8x1xf32>
    %130 = vector.broadcast %129 : vector<1x8x1xf32> to vector<1x8x32xf32>
    %131 = arith.subf %125, %130 : vector<1x8x32xf32>
    %132 = arith.mulf %131, %131 : vector<1x8x32xf32>
    %cst_38 = arith.constant dense<0.000000e+00> : vector<1x8xf32>
    %133 = vector.multi_reduction <add>, %132, %cst_38 [2] : vector<1x8x32xf32> to vector<1x8xf32>
    %134 = vector.shape_cast %133 : vector<1x8xf32> to vector<1x8x1xf32>
    %cst_39 = arith.constant 3.200000e+01 : f32
    %135 = vector.broadcast %cst_39 : f32 to vector<1x8x1xf32>
    %136 = arith.divf %134, %135 : vector<1x8x1xf32>
    %137 = vector.broadcast %129 : vector<1x8x1xf32> to vector<1x8x32xf32>
    %138 = arith.subf %125, %137 : vector<1x8x32xf32>
    %cst_40 = arith.constant 9.99999974E-6 : f32
    %139 = vector.broadcast %cst_40 : f32 to vector<1x8x1xf32>
    %140 = arith.addf %136, %139 : vector<1x8x1xf32>
    %141 = math.rsqrt %140 : vector<1x8x1xf32>
    %142 = vector.broadcast %141 : vector<1x8x1xf32> to vector<1x8x32xf32>
    %143 = arith.mulf %138, %142 : vector<1x8x32xf32>
    %c0_41 = arith.constant 0 : index
    %c0_42 = arith.constant 0 : index
    %144 = vector.load %arg7[%c0_41, %c0_42] : memref<1x32xf32, #tpu.memory_space<vmem>>, vector<1x32xf32>
    %145 = vector.shape_cast %144 : vector<1x32xf32> to vector<1x1x32xf32>
    %146 = vector.broadcast %145 : vector<1x1x32xf32> to vector<1x8x32xf32>
    %147 = arith.mulf %143, %146 : vector<1x8x32xf32>
    %c0_43 = arith.constant 0 : index
    %c0_44 = arith.constant 0 : index
    %148 = vector.load %arg8[%c0_43, %c0_44] : memref<1x32xf32, #tpu.memory_space<vmem>>, vector<1x32xf32>
    %149 = vector.shape_cast %148 : vector<1x32xf32> to vector<1x1x32xf32>
    %150 = vector.broadcast %149 : vector<1x1x32xf32> to vector<1x8x32xf32>
    %151 = arith.addf %147, %150 : vector<1x8x32xf32>
    %152 = vector.shape_cast %151 : vector<1x8x32xf32> to vector<8x32xf32>
    %153 = arith.truncf %152 : vector<8x32xf32> to vector<8x32xbf16>
    %c0_45 = arith.constant 0 : index
    %c0_46 = arith.constant 0 : index
    %154 = vector.load %arg9[%c0_45, %c0_46] : memref<32x64xbf16, #tpu.memory_space<vmem>>, vector<32x64xbf16>
    %cst_47 = arith.constant dense<0.000000e+00> : vector<8x64xf32>
    %155 = tpu.matmul %153, %154, %cst_47 {dimension_numbers = #tpu.dot_dimension_numbers<[1], [0], [0], [1], [0, 0, 1, 1], [], []>} : vector<8x32xbf16>, vector<32x64xbf16>, vector<8x64xf32> -> vector<8x64xf32>
    %c0_48 = arith.constant 0 : index
    %c0_49 = arith.constant 0 : index
    %156 = vector.load %arg10[%c0_48, %c0_49] : memref<1x64xf32, #tpu.memory_space<vmem>>, vector<1x64xf32>
    %157 = vector.broadcast %156 : vector<1x64xf32> to vector<8x64xf32>
    %158 = arith.addf %155, %157 : vector<8x64xf32>
    %cst_50 = arith.constant 0.000000e+00 : f32
    %159 = vector.broadcast %cst_50 : f32 to vector<8x64xf32>
    %160 = arith.maximumf %158, %159 : vector<8x64xf32>
    %161 = arith.truncf %160 : vector<8x64xf32> to vector<8x64xbf16>
    %c0_51 = arith.constant 0 : index
    %c0_52 = arith.constant 0 : index
    %162 = vector.load %arg11[%c0_51, %c0_52] : memref<64x32xbf16, #tpu.memory_space<vmem>>, vector<64x32xbf16>
    %cst_53 = arith.constant dense<0.000000e+00> : vector<8x32xf32>
    %163 = tpu.matmul %161, %162, %cst_53 {dimension_numbers = #tpu.dot_dimension_numbers<[1], [0], [0], [1], [0, 0, 1, 1], [], []>} : vector<8x64xbf16>, vector<64x32xbf16>, vector<8x32xf32> -> vector<8x32xf32>
    %c0_54 = arith.constant 0 : index
    %c0_55 = arith.constant 0 : index
    %164 = vector.load %arg12[%c0_54, %c0_55] : memref<1x32xf32, #tpu.memory_space<vmem>>, vector<1x32xf32>
    %165 = vector.broadcast %164 : vector<1x32xf32> to vector<8x32xf32>
    %166 = arith.addf %163, %165 : vector<8x32xf32>
    %167 = vector.shape_cast %166 : vector<8x32xf32> to vector<1x8x32xf32>
    %168 = arith.addf %151, %167 : vector<1x8x32xf32>
    %cst_56 = arith.constant dense<0.000000e+00> : vector<1x8xf32>
    %169 = vector.multi_reduction <add>, %168, %cst_56 [2] : vector<1x8x32xf32> to vector<1x8xf32>
    %170 = vector.shape_cast %169 : vector<1x8xf32> to vector<1x8x1xf32>
    %cst_57 = arith.constant 3.200000e+01 : f32
    %171 = vector.broadcast %cst_57 : f32 to vector<1x8x1xf32>
    %172 = arith.divf %170, %171 : vector<1x8x1xf32>
    %173 = vector.broadcast %172 : vector<1x8x1xf32> to vector<1x8x32xf32>
    %174 = arith.subf %168, %173 : vector<1x8x32xf32>
    %175 = arith.mulf %174, %174 : vector<1x8x32xf32>
    %cst_58 = arith.constant dense<0.000000e+00> : vector<1x8xf32>
    %176 = vector.multi_reduction <add>, %175, %cst_58 [2] : vector<1x8x32xf32> to vector<1x8xf32>
    %177 = vector.shape_cast %176 : vector<1x8xf32> to vector<1x8x1xf32>
    %cst_59 = arith.constant 3.200000e+01 : f32
    %178 = vector.broadcast %cst_59 : f32 to vector<1x8x1xf32>
    %179 = arith.divf %177, %178 : vector<1x8x1xf32>
    %180 = vector.broadcast %172 : vector<1x8x1xf32> to vector<1x8x32xf32>
    %181 = arith.subf %168, %180 : vector<1x8x32xf32>
    %cst_60 = arith.constant 9.99999974E-6 : f32
    %182 = vector.broadcast %cst_60 : f32 to vector<1x8x1xf32>
    %183 = arith.addf %179, %182 : vector<1x8x1xf32>
    %184 = math.rsqrt %183 : vector<1x8x1xf32>
    %185 = vector.broadcast %184 : vector<1x8x1xf32> to vector<1x8x32xf32>
    %186 = arith.mulf %181, %185 : vector<1x8x32xf32>
    %c0_61 = arith.constant 0 : index
    %c0_62 = arith.constant 0 : index
    %187 = vector.load %arg13[%c0_61, %c0_62] : memref<1x32xf32, #tpu.memory_space<vmem>>, vector<1x32xf32>
    %188 = vector.shape_cast %187 : vector<1x32xf32> to vector<1x1x32xf32>
    %189 = vector.broadcast %188 : vector<1x1x32xf32> to vector<1x8x32xf32>
    %190 = arith.mulf %186, %189 : vector<1x8x32xf32>
    %c0_63 = arith.constant 0 : index
    %c0_64 = arith.constant 0 : index
    %191 = vector.load %arg14[%c0_63, %c0_64] : memref<1x32xf32, #tpu.memory_space<vmem>>, vector<1x32xf32>
    %192 = vector.shape_cast %191 : vector<1x32xf32> to vector<1x1x32xf32>
    %193 = vector.broadcast %192 : vector<1x1x32xf32> to vector<1x8x32xf32>
    %194 = arith.addf %190, %193 : vector<1x8x32xf32>
    %195 = arith.truncf %194 : vector<1x8x32xf32> to vector<1x8x32xbf16>
    %c0_65 = arith.constant 0 : index
    %c0_66 = arith.constant 0 : index
    %c0_67 = arith.constant 0 : index
    %196 = vector.load %arg15[%c0_65, %c0_66, %c0_67] : memref<1x8x32xbf16, #tpu.memory_space<vmem>>, vector<1x8x32xbf16>
    tpu.vector_store %arg15[%c0_65, %c0_66, %c0_67], %195 {strides = array<i32>} : memref<1x8x32xbf16, #tpu.memory_space<vmem>>, vector<1x8x32xbf16>,
    return
  }
  func.func @transform_0(%arg0: i32) -> (i32, i32, i32) {
    %c0_i32 = arith.constant 0 : i32
    %c0_i32_0 = arith.constant 0 : i32
    %c0_i32_1 = arith.constant 0 : i32
    return %arg0, %c0_i32, %c0_i32_0 : i32, i32, i32
  }
  func.func @transform_1(%arg0: i32) -> (i32, i32) {
    %c0_i32 = arith.constant 0 : i32
    %c0_i32_0 = arith.constant 0 : i32
    %c0_i32_1 = arith.constant 0 : i32
    return %c0_i32, %c0_i32_0 : i32, i32
  }
  func.func @transform_2(%arg0: i32) -> (i32, i32) {
    %c0_i32 = arith.constant 0 : i32
    %c0_i32_0 = arith.constant 0 : i32
    %c0_i32_1 = arith.constant 0 : i32
    return %c0_i32, %c0_i32_0 : i32, i32
  }
  func.func @transform_3(%arg0: i32) -> (i32, i32) {
    %c0_i32 = arith.constant 0 : i32
    %c0_i32_0 = arith.constant 0 : i32
    %c0_i32_1 = arith.constant 0 : i32
    return %c0_i32, %c0_i32_0 : i32, i32
  }
  func.func @transform_4(%arg0: i32) -> (i32, i32) {
    %c0_i32 = arith.constant 0 : i32
    %c0_i32_0 = arith.constant 0 : i32
    %c0_i32_1 = arith.constant 0 : i32
    return %c0_i32, %c0_i32_0 : i32, i32
  }
  func.func @transform_5(%arg0: i32) -> (i32, i32) {
    %c0_i32 = arith.constant 0 : i32
    %c0_i32_0 = arith.constant 0 : i32
    %c0_i32_1 = arith.constant 0 : i32
    return %c0_i32, %c0_i32_0 : i32, i32
  }
  func.func @transform_6(%arg0: i32) -> (i32, i32) {
    %c0_i32 = arith.constant 0 : i32
    %c0_i32_0 = arith.constant 0 : i32
    %c0_i32_1 = arith.constant 0 : i32
    return %c0_i32, %c0_i32_0 : i32, i32
  }
  func.func @transform_7(%arg0: i32) -> (i32, i32) {
    %c0_i32 = arith.constant 0 : i32
    %c0_i32_0 = arith.constant 0 : i32
    %c0_i32_1 = arith.constant 0 : i32
    return %c0_i32, %c0_i32_0 : i32, i32
  }
  func.func @transform_8(%arg0: i32) -> (i32, i32) {
    %c0_i32 = arith.constant 0 : i32
    %c0_i32_0 = arith.constant 0 : i32
    %c0_i32_1 = arith.constant 0 : i32
    return %c0_i32, %c0_i32_0 : i32, i32
  }
  func.func @transform_9(%arg0: i32) -> (i32, i32) {
    %c0_i32 = arith.constant 0 : i32
    %c0_i32_0 = arith.constant 0 : i32
    %c0_i32_1 = arith.constant 0 : i32
    return %c0_i32, %c0_i32_0 : i32, i32
  }
  func.func @transform_10(%arg0: i32) -> (i32, i32) {
    %c0_i32 = arith.constant 0 : i32
    %c0_i32_0 = arith.constant 0 : i32
    %c0_i32_1 = arith.constant 0 : i32
    return %c0_i32, %c0_i32_0 : i32, i32
  }
  func.func @transform_11(%arg0: i32) -> (i32, i32) {
    %c0_i32 = arith.constant 0 : i32
    %c0_i32_0 = arith.constant 0 : i32
    %c0_i32_1 = arith.constant 0 : i32
    return %c0_i32, %c0_i32_0 : i32, i32
  }
  func.func @transform_12(%arg0: i32) -> (i32, i32) {
    %c0_i32 = arith.constant 0 : i32
    %c0_i32_0 = arith.constant 0 : i32
    %c0_i32_1 = arith.constant 0 : i32
    return %c0_i32, %c0_i32_0 : i32, i32
  }
  func.func @transform_13(%arg0: i32) -> (i32, i32) {
    %c0_i32 = arith.constant 0 : i32
    %c0_i32_0 = arith.constant 0 : i32
    %c0_i32_1 = arith.constant 0 : i32
    return %c0_i32, %c0_i32_0 : i32, i32
  }
  func.func @transform_14(%arg0: i32) -> (i32, i32, i32) {
    %c0_i32 = arith.constant 0 : i32
    %c0_i32_0 = arith.constant 0 : i32
    %c0_i32_1 = arith.constant 0 : i32
    return %arg0, %c0_i32, %c0_i32_0 : i32, i32, i32
  }
}

module attributes {stable_mosaic.version = 11 : i64} {
  func.func @_encoder_layer_kernel(%arg0: i32, %arg1: memref<1x8x32xbf16, #tpu.memory_space<vmem>>, %arg2: memref<32x96xbf16, #tpu.memory_space<vmem>>, %arg3: memref<1x96xf32, #tpu.memory_space<vmem>>, %arg4: memref<32x32xbf16, #tpu.memory_space<vmem>>, %arg5: memref<1x32xf32, #tpu.memory_space<vmem>>, %arg6: memref<1x32xf32, #tpu.memory_space<vmem>>, %arg7: memref<1x32xf32, #tpu.memory_space<vmem>>, %arg8: memref<32x64xbf16, #tpu.memory_space<vmem>>, %arg9: memref<1x64xf32, #tpu.memory_space<vmem>>, %arg10: memref<64x32xbf16, #tpu.memory_space<vmem>>, %arg11: memref<1x32xf32, #tpu.memory_space<vmem>>, %arg12: memref<1x32xf32, #tpu.memory_space<vmem>>, %arg13: memref<1x32xf32, #tpu.memory_space<vmem>>, %arg14: memref<1x8x32xbf16, #tpu.memory_space<vmem>>) attributes {dimension_semantics = [#tpu.dimension_semantics<parallel>], iteration_bounds = array<i64: 2>, scalar_prefetch = 0 : i64, scratch_operands = 0 : i64, tpu.core_type = #tpu.core_type<tc>, window_params = [{transform_indices = @transform_0, window_bounds = array<i64: 1, 8, 32>}, {pipeline_mode = #tpu.pipeline_mode<synchronous>, transform_indices = @transform_1, window_bounds = array<i64: 32, 96>}, {pipeline_mode = #tpu.pipeline_mode<synchronous>, transform_indices = @transform_2, window_bounds = array<i64: 1, 96>}, {pipeline_mode = #tpu.pipeline_mode<synchronous>, transform_indices = @transform_3, window_bounds = array<i64: 32, 32>}, {pipeline_mode = #tpu.pipeline_mode<synchronous>, transform_indices = @transform_4, window_bounds = array<i64: 1, 32>}, {pipeline_mode = #tpu.pipeline_mode<synchronous>, transform_indices = @transform_5, window_bounds = array<i64: 1, 32>}, {pipeline_mode = #tpu.pipeline_mode<synchronous>, transform_indices = @transform_6, window_bounds = array<i64: 1, 32>}, {pipeline_mode = #tpu.pipeline_mode<synchronous>, transform_indices = @transform_7, window_bounds = array<i64: 32, 64>}, {pipeline_mode = #tpu.pipeline_mode<synchronous>, transform_indices = @transform_8, window_bounds = array<i64: 1, 64>}, {pipeline_mode = #tpu.pipeline_mode<synchronous>, transform_indices = @transform_9, window_bounds = array<i64: 64, 32>}, {pipeline_mode = #tpu.pipeline_mode<synchronous>, transform_indices = @transform_10, window_bounds = array<i64: 1, 32>}, {pipeline_mode = #tpu.pipeline_mode<synchronous>, transform_indices = @transform_11, window_bounds = array<i64: 1, 32>}, {pipeline_mode = #tpu.pipeline_mode<synchronous>, transform_indices = @transform_12, window_bounds = array<i64: 1, 32>}, {transform_indices = @transform_13, window_bounds = array<i64: 1, 8, 32>}]} {
    %c0 = arith.constant 0 : index
    %c0_0 = arith.constant 0 : index
    %c0_1 = arith.constant 0 : index
    %0 = vector.load %arg1[%c0, %c0_0, %c0_1] : memref<1x8x32xbf16, #tpu.memory_space<vmem>>, vector<1x8x32xbf16>
    %1 = arith.extf %0 : vector<1x8x32xbf16> to vector<1x8x32xf32>
    %2 = arith.truncf %1 : vector<1x8x32xf32> to vector<1x8x32xbf16>
    %3 = vector.shape_cast %2 : vector<1x8x32xbf16> to vector<8x32xbf16>
    %c0_2 = arith.constant 0 : index
    %c0_3 = arith.constant 0 : index
    %4 = vector.load %arg2[%c0_2, %c0_3] : memref<32x96xbf16, #tpu.memory_space<vmem>>, vector<32x96xbf16>
    %cst = arith.constant dense<0.000000e+00> : vector<8x96xf32>
    %5 = tpu.matmul %3, %4, %cst {dimension_numbers = #tpu.dot_dimension_numbers<[1], [0], [0], [1], [0, 0, 1, 1], [], []>} : vector<8x32xbf16>, vector<32x96xbf16>, vector<8x96xf32> -> vector<8x96xf32>
    %c0_4 = arith.constant 0 : index
    %c0_5 = arith.constant 0 : index
    %6 = vector.load %arg3[%c0_4, %c0_5] : memref<1x96xf32, #tpu.memory_space<vmem>>, vector<1x96xf32>
    %7 = vector.broadcast %6 : vector<1x96xf32> to vector<8x96xf32>
    %8 = arith.addf %5, %7 : vector<8x96xf32>
    %9 = vector.shape_cast %8 : vector<8x96xf32> to vector<1x8x96xf32>
    %10 = tpu.iota {dimensions = array<i32: 0>} : vector<8x8xi32>
    %11 = tpu.iota {dimensions = array<i32: 1>} : vector<8x8xi32>
    %12 = arith.cmpi sge, %10, %11 : vector<8x8xi32>
    %cst_6 = arith.constant 0.000000e+00 : f32
    %cst_7 = arith.constant 0xFF800000 : f32
    %13 = vector.broadcast %cst_6 : f32 to vector<8x8xf32>
    %14 = vector.broadcast %cst_7 : f32 to vector<8x8xf32>
    %15 = arith.select %12, %13, %14 : vector<8x8xi1>, vector<8x8xf32>
    %16 = vector.extract_strided_slice %9 {offsets = [0, 0, 0], sizes = [1, 8, 8], strides = [1, 1, 1]} : vector<1x8x96xf32> to vector<1x8x8xf32>
    %cst_8 = arith.constant 0.353553385 : f32
    %17 = vector.broadcast %cst_8 : f32 to vector<1x8x8xf32>
    %18 = arith.mulf %16, %17 : vector<1x8x8xf32>
    %19 = vector.extract_strided_slice %9 {offsets = [0, 0, 32], sizes = [1, 8, 8], strides = [1, 1, 1]} : vector<1x8x96xf32> to vector<1x8x8xf32>
    %20 = vector.extract_strided_slice %9 {offsets = [0, 0, 64], sizes = [1, 8, 8], strides = [1, 1, 1]} : vector<1x8x96xf32> to vector<1x8x8xf32>
    %21 = arith.truncf %18 : vector<1x8x8xf32> to vector<1x8x8xbf16>
    %22 = arith.truncf %19 : vector<1x8x8xf32> to vector<1x8x8xbf16>
    "tpu.trace_start"() <{level = 10 : i32, message = "bqd,bkd->bqk"}> : () -> ()
    %cst_9 = arith.constant dense<0.000000e+00> : vector<1x8x8xf32>
    %23 = tpu.matmul %21, %22, %cst_9 {dimension_numbers = #tpu.dot_dimension_numbers<[2], [2], [1], [1], [0, 0, 0, 1, 1, 1], [0], [0]>} : vector<1x8x8xbf16>, vector<1x8x8xbf16>, vector<1x8x8xf32> -> vector<1x8x8xf32>
    "tpu.trace_stop"() : () -> ()
    %24 = vector.shape_cast %15 : vector<8x8xf32> to vector<1x8x8xf32>
    %25 = arith.addf %23, %24 : vector<1x8x8xf32>
    %cst_10 = arith.constant dense<0xFF800000> : vector<1x8xf32>
    %26 = vector.multi_reduction <maximumf>, %25, %cst_10 [2] : vector<1x8x8xf32> to vector<1x8xf32>
    %27 = vector.shape_cast %26 : vector<1x8xf32> to vector<1x8x1xf32>
    %28 = vector.broadcast %27 : vector<1x8x1xf32> to vector<1x8x8xf32>
    %29 = arith.subf %25, %28 : vector<1x8x8xf32>
    %30 = math.exp %29 : vector<1x8x8xf32>
    %cst_11 = arith.constant dense<0.000000e+00> : vector<1x8xf32>
    %31 = vector.multi_reduction <add>, %30, %cst_11 [2] : vector<1x8x8xf32> to vector<1x8xf32>
    %32 = vector.shape_cast %31 : vector<1x8xf32> to vector<1x8x1xf32>
    %33 = tpu.reciprocal %32 {approx = true} : vector<1x8x1xf32> -> vector<1x8x1xf32>
    %34 = vector.broadcast %33 : vector<1x8x1xf32> to vector<1x8x8xf32>
    %35 = arith.mulf %30, %34 : vector<1x8x8xf32>
    %36 = arith.truncf %35 : vector<1x8x8xf32> to vector<1x8x8xbf16>
    %37 = arith.truncf %20 : vector<1x8x8xf32> to vector<1x8x8xbf16>
    "tpu.trace_start"() <{level = 10 : i32, message = "bqk,bkd->bqd"}> : () -> ()
    %cst_12 = arith.constant dense<0.000000e+00> : vector<1x8x8xf32>
    %38 = tpu.matmul %36, %37, %cst_12 {dimension_numbers = #tpu.dot_dimension_numbers<[2], [1], [1], [2], [0, 0, 0, 1, 1, 2], [0], [0]>} : vector<1x8x8xbf16>, vector<1x8x8xbf16>, vector<1x8x8xf32> -> vector<1x8x8xf32>
    "tpu.trace_stop"() : () -> ()
    %39 = arith.truncf %38 : vector<1x8x8xf32> to vector<1x8x8xbf16>
    %40 = vector.extract_strided_slice %9 {offsets = [0, 0, 8], sizes = [1, 8, 8], strides = [1, 1, 1]} : vector<1x8x96xf32> to vector<1x8x8xf32>
    %cst_13 = arith.constant 0.353553385 : f32
    %41 = vector.broadcast %cst_13 : f32 to vector<1x8x8xf32>
    %42 = arith.mulf %40, %41 : vector<1x8x8xf32>
    %43 = vector.extract_strided_slice %9 {offsets = [0, 0, 40], sizes = [1, 8, 8], strides = [1, 1, 1]} : vector<1x8x96xf32> to vector<1x8x8xf32>
    %44 = vector.extract_strided_slice %9 {offsets = [0, 0, 72], sizes = [1, 8, 8], strides = [1, 1, 1]} : vector<1x8x96xf32> to vector<1x8x8xf32>
    %45 = arith.truncf %42 : vector<1x8x8xf32> to vector<1x8x8xbf16>
    %46 = arith.truncf %43 : vector<1x8x8xf32> to vector<1x8x8xbf16>
    "tpu.trace_start"() <{level = 10 : i32, message = "bqd,bkd->bqk"}> : () -> ()
    %cst_14 = arith.constant dense<0.000000e+00> : vector<1x8x8xf32>
    %47 = tpu.matmul %45, %46, %cst_14 {dimension_numbers = #tpu.dot_dimension_numbers<[2], [2], [1], [1], [0, 0, 0, 1, 1, 1], [0], [0]>} : vector<1x8x8xbf16>, vector<1x8x8xbf16>, vector<1x8x8xf32> -> vector<1x8x8xf32>
    "tpu.trace_stop"() : () -> ()
    %48 = vector.shape_cast %15 : vector<8x8xf32> to vector<1x8x8xf32>
    %49 = arith.addf %47, %48 : vector<1x8x8xf32>
    %cst_15 = arith.constant dense<0xFF800000> : vector<1x8xf32>
    %50 = vector.multi_reduction <maximumf>, %49, %cst_15 [2] : vector<1x8x8xf32> to vector<1x8xf32>
    %51 = vector.shape_cast %50 : vector<1x8xf32> to vector<1x8x1xf32>
    %52 = vector.broadcast %51 : vector<1x8x1xf32> to vector<1x8x8xf32>
    %53 = arith.subf %49, %52 : vector<1x8x8xf32>
    %54 = math.exp %53 : vector<1x8x8xf32>
    %cst_16 = arith.constant dense<0.000000e+00> : vector<1x8xf32>
    %55 = vector.multi_reduction <add>, %54, %cst_16 [2] : vector<1x8x8xf32> to vector<1x8xf32>
    %56 = vector.shape_cast %55 : vector<1x8xf32> to vector<1x8x1xf32>
    %57 = tpu.reciprocal %56 {approx = true} : vector<1x8x1xf32> -> vector<1x8x1xf32>
    %58 = vector.broadcast %57 : vector<1x8x1xf32> to vector<1x8x8xf32>
    %59 = arith.mulf %54, %58 : vector<1x8x8xf32>
    %60 = arith.truncf %59 : vector<1x8x8xf32> to vector<1x8x8xbf16>
    %61 = arith.truncf %44 : vector<1x8x8xf32> to vector<1x8x8xbf16>
    "tpu.trace_start"() <{level = 10 : i32, message = "bqk,bkd->bqd"}> : () -> ()
    %cst_17 = arith.constant dense<0.000000e+00> : vector<1x8x8xf32>
    %62 = tpu.matmul %60, %61, %cst_17 {dimension_numbers = #tpu.dot_dimension_numbers<[2], [1], [1], [2], [0, 0, 0, 1, 1, 2], [0], [0]>} : vector<1x8x8xbf16>, vector<1x8x8xbf16>, vector<1x8x8xf32> -> vector<1x8x8xf32>
    "tpu.trace_stop"() : () -> ()
    %63 = arith.truncf %62 : vector<1x8x8xf32> to vector<1x8x8xbf16>
    %64 = vector.extract_strided_slice %9 {offsets = [0, 0, 16], sizes = [1, 8, 8], strides = [1, 1, 1]} : vector<1x8x96xf32> to vector<1x8x8xf32>
    %cst_18 = arith.constant 0.353553385 : f32
    %65 = vector.broadcast %cst_18 : f32 to vector<1x8x8xf32>
    %66 = arith.mulf %64, %65 : vector<1x8x8xf32>
    %67 = vector.extract_strided_slice %9 {offsets = [0, 0, 48], sizes = [1, 8, 8], strides = [1, 1, 1]} : vector<1x8x96xf32> to vector<1x8x8xf32>
    %68 = vector.extract_strided_slice %9 {offsets = [0, 0, 80], sizes = [1, 8, 8], strides = [1, 1, 1]} : vector<1x8x96xf32> to vector<1x8x8xf32>
    %69 = arith.truncf %66 : vector<1x8x8xf32> to vector<1x8x8xbf16>
    %70 = arith.truncf %67 : vector<1x8x8xf32> to vector<1x8x8xbf16>
    "tpu.trace_start"() <{level = 10 : i32, message = "bqd,bkd->bqk"}> : () -> ()
    %cst_19 = arith.constant dense<0.000000e+00> : vector<1x8x8xf32>
    %71 = tpu.matmul %69, %70, %cst_19 {dimension_numbers = #tpu.dot_dimension_numbers<[2], [2], [1], [1], [0, 0, 0, 1, 1, 1], [0], [0]>} : vector<1x8x8xbf16>, vector<1x8x8xbf16>, vector<1x8x8xf32> -> vector<1x8x8xf32>
    "tpu.trace_stop"() : () -> ()
    %72 = vector.shape_cast %15 : vector<8x8xf32> to vector<1x8x8xf32>
    %73 = arith.addf %71, %72 : vector<1x8x8xf32>
    %cst_20 = arith.constant dense<0xFF800000> : vector<1x8xf32>
    %74 = vector.multi_reduction <maximumf>, %73, %cst_20 [2] : vector<1x8x8xf32> to vector<1x8xf32>
    %75 = vector.shape_cast %74 : vector<1x8xf32> to vector<1x8x1xf32>
    %76 = vector.broadcast %75 : vector<1x8x1xf32> to vector<1x8x8xf32>
    %77 = arith.subf %73, %76 : vector<1x8x8xf32>
    %78 = math.exp %77 : vector<1x8x8xf32>
    %cst_21 = arith.constant dense<0.000000e+00> : vector<1x8xf32>
    %79 = vector.multi_reduction <add>, %78, %cst_21 [2] : vector<1x8x8xf32> to vector<1x8xf32>
    %80 = vector.shape_cast %79 : vector<1x8xf32> to vector<1x8x1xf32>
    %81 = tpu.reciprocal %80 {approx = true} : vector<1x8x1xf32> -> vector<1x8x1xf32>
    %82 = vector.broadcast %81 : vector<1x8x1xf32> to vector<1x8x8xf32>
    %83 = arith.mulf %78, %82 : vector<1x8x8xf32>
    %84 = arith.truncf %83 : vector<1x8x8xf32> to vector<1x8x8xbf16>
    %85 = arith.truncf %68 : vector<1x8x8xf32> to vector<1x8x8xbf16>
    "tpu.trace_start"() <{level = 10 : i32, message = "bqk,bkd->bqd"}> : () -> ()
    %cst_22 = arith.constant dense<0.000000e+00> : vector<1x8x8xf32>
    %86 = tpu.matmul %84, %85, %cst_22 {dimension_numbers = #tpu.dot_dimension_numbers<[2], [1], [1], [2], [0, 0, 0, 1, 1, 2], [0], [0]>} : vector<1x8x8xbf16>, vector<1x8x8xbf16>, vector<1x8x8xf32> -> vector<1x8x8xf32>
    "tpu.trace_stop"() : () -> ()
    %87 = arith.truncf %86 : vector<1x8x8xf32> to vector<1x8x8xbf16>
    %88 = vector.extract_strided_slice %9 {offsets = [0, 0, 24], sizes = [1, 8, 8], strides = [1, 1, 1]} : vector<1x8x96xf32> to vector<1x8x8xf32>
    %cst_23 = arith.constant 0.353553385 : f32
    %89 = vector.broadcast %cst_23 : f32 to vector<1x8x8xf32>
    %90 = arith.mulf %88, %89 : vector<1x8x8xf32>
    %91 = vector.extract_strided_slice %9 {offsets = [0, 0, 56], sizes = [1, 8, 8], strides = [1, 1, 1]} : vector<1x8x96xf32> to vector<1x8x8xf32>
    %92 = vector.extract_strided_slice %9 {offsets = [0, 0, 88], sizes = [1, 8, 8], strides = [1, 1, 1]} : vector<1x8x96xf32> to vector<1x8x8xf32>
    %93 = arith.truncf %90 : vector<1x8x8xf32> to vector<1x8x8xbf16>
    %94 = arith.truncf %91 : vector<1x8x8xf32> to vector<1x8x8xbf16>
    "tpu.trace_start"() <{level = 10 : i32, message = "bqd,bkd->bqk"}> : () -> ()
    %cst_24 = arith.constant dense<0.000000e+00> : vector<1x8x8xf32>
    %95 = tpu.matmul %93, %94, %cst_24 {dimension_numbers = #tpu.dot_dimension_numbers<[2], [2], [1], [1], [0, 0, 0, 1, 1, 1], [0], [0]>} : vector<1x8x8xbf16>, vector<1x8x8xbf16>, vector<1x8x8xf32> -> vector<1x8x8xf32>
    "tpu.trace_stop"() : () -> ()
    %96 = vector.shape_cast %15 : vector<8x8xf32> to vector<1x8x8xf32>
    %97 = arith.addf %95, %96 : vector<1x8x8xf32>
    %cst_25 = arith.constant dense<0xFF800000> : vector<1x8xf32>
    %98 = vector.multi_reduction <maximumf>, %97, %cst_25 [2] : vector<1x8x8xf32> to vector<1x8xf32>
    %99 = vector.shape_cast %98 : vector<1x8xf32> to vector<1x8x1xf32>
    %100 = vector.broadcast %99 : vector<1x8x1xf32> to vector<1x8x8xf32>
    %101 = arith.subf %97, %100 : vector<1x8x8xf32>
    %102 = math.exp %101 : vector<1x8x8xf32>
    %cst_26 = arith.constant dense<0.000000e+00> : vector<1x8xf32>
    %103 = vector.multi_reduction <add>, %102, %cst_26 [2] : vector<1x8x8xf32> to vector<1x8xf32>
    %104 = vector.shape_cast %103 : vector<1x8xf32> to vector<1x8x1xf32>
    %105 = tpu.reciprocal %104 {approx = true} : vector<1x8x1xf32> -> vector<1x8x1xf32>
    %106 = vector.broadcast %105 : vector<1x8x1xf32> to vector<1x8x8xf32>
    %107 = arith.mulf %102, %106 : vector<1x8x8xf32>
    %108 = arith.truncf %107 : vector<1x8x8xf32> to vector<1x8x8xbf16>
    %109 = arith.truncf %92 : vector<1x8x8xf32> to vector<1x8x8xbf16>
    "tpu.trace_start"() <{level = 10 : i32, message = "bqk,bkd->bqd"}> : () -> ()
    %cst_27 = arith.constant dense<0.000000e+00> : vector<1x8x8xf32>
    %110 = tpu.matmul %108, %109, %cst_27 {dimension_numbers = #tpu.dot_dimension_numbers<[2], [1], [1], [2], [0, 0, 0, 1, 1, 2], [0], [0]>} : vector<1x8x8xbf16>, vector<1x8x8xbf16>, vector<1x8x8xf32> -> vector<1x8x8xf32>
    "tpu.trace_stop"() : () -> ()
    %111 = arith.truncf %110 : vector<1x8x8xf32> to vector<1x8x8xbf16>
    %112 = tpu.concatenate %39, %63, %87, %111 in 2 : vector<1x8x8xbf16>, vector<1x8x8xbf16>, vector<1x8x8xbf16>, vector<1x8x8xbf16> -> vector<1x8x32xbf16>
    %113 = vector.shape_cast %112 : vector<1x8x32xbf16> to vector<8x32xbf16>
    %c0_28 = arith.constant 0 : index
    %c0_29 = arith.constant 0 : index
    %114 = vector.load %arg4[%c0_28, %c0_29] : memref<32x32xbf16, #tpu.memory_space<vmem>>, vector<32x32xbf16>
    %cst_30 = arith.constant dense<0.000000e+00> : vector<8x32xf32>
    %115 = tpu.matmul %113, %114, %cst_30 {dimension_numbers = #tpu.dot_dimension_numbers<[1], [0], [0], [1], [0, 0, 1, 1], [], []>} : vector<8x32xbf16>, vector<32x32xbf16>, vector<8x32xf32> -> vector<8x32xf32>
    %c0_31 = arith.constant 0 : index
    %c0_32 = arith.constant 0 : index
    %116 = vector.load %arg5[%c0_31, %c0_32] : memref<1x32xf32, #tpu.memory_space<vmem>>, vector<1x32xf32>
    %117 = vector.broadcast %116 : vector<1x32xf32> to vector<8x32xf32>
    %118 = arith.addf %115, %117 : vector<8x32xf32>
    %119 = vector.shape_cast %118 : vector<8x32xf32> to vector<1x8x32xf32>
    %120 = arith.addf %1, %119 : vector<1x8x32xf32>
    %cst_33 = arith.constant dense<0.000000e+00> : vector<1x8xf32>
    %121 = vector.multi_reduction <add>, %120, %cst_33 [2] : vector<1x8x32xf32> to vector<1x8xf32>
    %122 = vector.shape_cast %121 : vector<1x8xf32> to vector<1x8x1xf32>
    %cst_34 = arith.constant 3.200000e+01 : f32
    %123 = vector.broadcast %cst_34 : f32 to vector<1x8x1xf32>
    %124 = arith.divf %122, %123 : vector<1x8x1xf32>
    %125 = vector.broadcast %124 : vector<1x8x1xf32> to vector<1x8x32xf32>
    %126 = arith.subf %120, %125 : vector<1x8x32xf32>
    %127 = arith.mulf %126, %126 : vector<1x8x32xf32>
    %cst_35 = arith.constant dense<0.000000e+00> : vector<1x8xf32>
    %128 = vector.multi_reduction <add>, %127, %cst_35 [2] : vector<1x8x32xf32> to vector<1x8xf32>
    %129 = vector.shape_cast %128 : vector<1x8xf32> to vector<1x8x1xf32>
    %cst_36 = arith.constant 3.200000e+01 : f32
    %130 = vector.broadcast %cst_36 : f32 to vector<1x8x1xf32>
    %131 = arith.divf %129, %130 : vector<1x8x1xf32>
    %132 = vector.broadcast %124 : vector<1x8x1xf32> to vector<1x8x32xf32>
    %133 = arith.subf %120, %132 : vector<1x8x32xf32>
    %cst_37 = arith.constant 9.99999974E-6 : f32
    %134 = vector.broadcast %cst_37 : f32 to vector<1x8x1xf32>
    %135 = arith.addf %131, %134 : vector<1x8x1xf32>
    %136 = math.rsqrt %135 : vector<1x8x1xf32>
    %137 = vector.broadcast %136 : vector<1x8x1xf32> to vector<1x8x32xf32>
    %138 = arith.mulf %133, %137 : vector<1x8x32xf32>
    %c0_38 = arith.constant 0 : index
    %c0_39 = arith.constant 0 : index
    %139 = vector.load %arg6[%c0_38, %c0_39] : memref<1x32xf32, #tpu.memory_space<vmem>>, vector<1x32xf32>
    %140 = vector.shape_cast %139 : vector<1x32xf32> to vector<1x1x32xf32>
    %141 = vector.broadcast %140 : vector<1x1x32xf32> to vector<1x8x32xf32>
    %142 = arith.mulf %138, %141 : vector<1x8x32xf32>
    %c0_40 = arith.constant 0 : index
    %c0_41 = arith.constant 0 : index
    %143 = vector.load %arg7[%c0_40, %c0_41] : memref<1x32xf32, #tpu.memory_space<vmem>>, vector<1x32xf32>
    %144 = vector.shape_cast %143 : vector<1x32xf32> to vector<1x1x32xf32>
    %145 = vector.broadcast %144 : vector<1x1x32xf32> to vector<1x8x32xf32>
    %146 = arith.addf %142, %145 : vector<1x8x32xf32>
    %147 = vector.shape_cast %146 : vector<1x8x32xf32> to vector<8x32xf32>
    %148 = arith.truncf %147 : vector<8x32xf32> to vector<8x32xbf16>
    %c0_42 = arith.constant 0 : index
    %c0_43 = arith.constant 0 : index
    %149 = vector.load %arg8[%c0_42, %c0_43] : memref<32x64xbf16, #tpu.memory_space<vmem>>, vector<32x64xbf16>
    %cst_44 = arith.constant dense<0.000000e+00> : vector<8x64xf32>
    %150 = tpu.matmul %148, %149, %cst_44 {dimension_numbers = #tpu.dot_dimension_numbers<[1], [0], [0], [1], [0, 0, 1, 1], [], []>} : vector<8x32xbf16>, vector<32x64xbf16>, vector<8x64xf32> -> vector<8x64xf32>
    %c0_45 = arith.constant 0 : index
    %c0_46 = arith.constant 0 : index
    %151 = vector.load %arg9[%c0_45, %c0_46] : memref<1x64xf32, #tpu.memory_space<vmem>>, vector<1x64xf32>
    %152 = vector.broadcast %151 : vector<1x64xf32> to vector<8x64xf32>
    %153 = arith.addf %150, %152 : vector<8x64xf32>
    %cst_47 = arith.constant 0.000000e+00 : f32
    %154 = vector.broadcast %cst_47 : f32 to vector<8x64xf32>
    %155 = arith.maximumf %153, %154 : vector<8x64xf32>
    %156 = arith.truncf %155 : vector<8x64xf32> to vector<8x64xbf16>
    %c0_48 = arith.constant 0 : index
    %c0_49 = arith.constant 0 : index
    %157 = vector.load %arg10[%c0_48, %c0_49] : memref<64x32xbf16, #tpu.memory_space<vmem>>, vector<64x32xbf16>
    %cst_50 = arith.constant dense<0.000000e+00> : vector<8x32xf32>
    %158 = tpu.matmul %156, %157, %cst_50 {dimension_numbers = #tpu.dot_dimension_numbers<[1], [0], [0], [1], [0, 0, 1, 1], [], []>} : vector<8x64xbf16>, vector<64x32xbf16>, vector<8x32xf32> -> vector<8x32xf32>
    %c0_51 = arith.constant 0 : index
    %c0_52 = arith.constant 0 : index
    %159 = vector.load %arg11[%c0_51, %c0_52] : memref<1x32xf32, #tpu.memory_space<vmem>>, vector<1x32xf32>
    %160 = vector.broadcast %159 : vector<1x32xf32> to vector<8x32xf32>
    %161 = arith.addf %158, %160 : vector<8x32xf32>
    %162 = vector.shape_cast %161 : vector<8x32xf32> to vector<1x8x32xf32>
    %163 = arith.addf %146, %162 : vector<1x8x32xf32>
    %cst_53 = arith.constant dense<0.000000e+00> : vector<1x8xf32>
    %164 = vector.multi_reduction <add>, %163, %cst_53 [2] : vector<1x8x32xf32> to vector<1x8xf32>
    %165 = vector.shape_cast %164 : vector<1x8xf32> to vector<1x8x1xf32>
    %cst_54 = arith.constant 3.200000e+01 : f32
    %166 = vector.broadcast %cst_54 : f32 to vector<1x8x1xf32>
    %167 = arith.divf %165, %166 : vector<1x8x1xf32>
    %168 = vector.broadcast %167 : vector<1x8x1xf32> to vector<1x8x32xf32>
    %169 = arith.subf %163, %168 : vector<1x8x32xf32>
    %170 = arith.mulf %169, %169 : vector<1x8x32xf32>
    %cst_55 = arith.constant dense<0.000000e+00> : vector<1x8xf32>
    %171 = vector.multi_reduction <add>, %170, %cst_55 [2] : vector<1x8x32xf32> to vector<1x8xf32>
    %172 = vector.shape_cast %171 : vector<1x8xf32> to vector<1x8x1xf32>
    %cst_56 = arith.constant 3.200000e+01 : f32
    %173 = vector.broadcast %cst_56 : f32 to vector<1x8x1xf32>
    %174 = arith.divf %172, %173 : vector<1x8x1xf32>
    %175 = vector.broadcast %167 : vector<1x8x1xf32> to vector<1x8x32xf32>
    %176 = arith.subf %163, %175 : vector<1x8x32xf32>
    %cst_57 = arith.constant 9.99999974E-6 : f32
    %177 = vector.broadcast %cst_57 : f32 to vector<1x8x1xf32>
    %178 = arith.addf %174, %177 : vector<1x8x1xf32>
    %179 = math.rsqrt %178 : vector<1x8x1xf32>
    %180 = vector.broadcast %179 : vector<1x8x1xf32> to vector<1x8x32xf32>
    %181 = arith.mulf %176, %180 : vector<1x8x32xf32>
    %c0_58 = arith.constant 0 : index
    %c0_59 = arith.constant 0 : index
    %182 = vector.load %arg12[%c0_58, %c0_59] : memref<1x32xf32, #tpu.memory_space<vmem>>, vector<1x32xf32>
    %183 = vector.shape_cast %182 : vector<1x32xf32> to vector<1x1x32xf32>
    %184 = vector.broadcast %183 : vector<1x1x32xf32> to vector<1x8x32xf32>
    %185 = arith.mulf %181, %184 : vector<1x8x32xf32>
    %c0_60 = arith.constant 0 : index
    %c0_61 = arith.constant 0 : index
    %186 = vector.load %arg13[%c0_60, %c0_61] : memref<1x32xf32, #tpu.memory_space<vmem>>, vector<1x32xf32>
    %187 = vector.shape_cast %186 : vector<1x32xf32> to vector<1x1x32xf32>
    %188 = vector.broadcast %187 : vector<1x1x32xf32> to vector<1x8x32xf32>
    %189 = arith.addf %185, %188 : vector<1x8x32xf32>
    %190 = arith.truncf %189 : vector<1x8x32xf32> to vector<1x8x32xbf16>
    %c0_62 = arith.constant 0 : index
    %c0_63 = arith.constant 0 : index
    %c0_64 = arith.constant 0 : index
    %191 = vector.load %arg14[%c0_62, %c0_63, %c0_64] : memref<1x8x32xbf16, #tpu.memory_space<vmem>>, vector<1x8x32xbf16>
    tpu.vector_store %arg14[%c0_62, %c0_63, %c0_64], %190 {strides = array<i32>} : memref<1x8x32xbf16, #tpu.memory_space<vmem>>, vector<1x8x32xbf16>,
    return
  }
  func.func @transform_0(%arg0: i32) -> (i32, i32, i32) {
    %c0_i32 = arith.constant 0 : i32
    %c0_i32_0 = arith.constant 0 : i32
    %c0_i32_1 = arith.constant 0 : i32
    return %arg0, %c0_i32, %c0_i32_0 : i32, i32, i32
  }
  func.func @transform_1(%arg0: i32) -> (i32, i32) {
    %c0_i32 = arith.constant 0 : i32
    %c0_i32_0 = arith.constant 0 : i32
    %c0_i32_1 = arith.constant 0 : i32
    return %c0_i32, %c0_i32_0 : i32, i32
  }
  func.func @transform_2(%arg0: i32) -> (i32, i32) {
    %c0_i32 = arith.constant 0 : i32
    %c0_i32_0 = arith.constant 0 : i32
    %c0_i32_1 = arith.constant 0 : i32
    return %c0_i32, %c0_i32_0 : i32, i32
  }
  func.func @transform_3(%arg0: i32) -> (i32, i32) {
    %c0_i32 = arith.constant 0 : i32
    %c0_i32_0 = arith.constant 0 : i32
    %c0_i32_1 = arith.constant 0 : i32
    return %c0_i32, %c0_i32_0 : i32, i32
  }
  func.func @transform_4(%arg0: i32) -> (i32, i32) {
    %c0_i32 = arith.constant 0 : i32
    %c0_i32_0 = arith.constant 0 : i32
    %c0_i32_1 = arith.constant 0 : i32
    return %c0_i32, %c0_i32_0 : i32, i32
  }
  func.func @transform_5(%arg0: i32) -> (i32, i32) {
    %c0_i32 = arith.constant 0 : i32
    %c0_i32_0 = arith.constant 0 : i32
    %c0_i32_1 = arith.constant 0 : i32
    return %c0_i32, %c0_i32_0 : i32, i32
  }
  func.func @transform_6(%arg0: i32) -> (i32, i32) {
    %c0_i32 = arith.constant 0 : i32
    %c0_i32_0 = arith.constant 0 : i32
    %c0_i32_1 = arith.constant 0 : i32
    return %c0_i32, %c0_i32_0 : i32, i32
  }
  func.func @transform_7(%arg0: i32) -> (i32, i32) {
    %c0_i32 = arith.constant 0 : i32
    %c0_i32_0 = arith.constant 0 : i32
    %c0_i32_1 = arith.constant 0 : i32
    return %c0_i32, %c0_i32_0 : i32, i32
  }
  func.func @transform_8(%arg0: i32) -> (i32, i32) {
    %c0_i32 = arith.constant 0 : i32
    %c0_i32_0 = arith.constant 0 : i32
    %c0_i32_1 = arith.constant 0 : i32
    return %c0_i32, %c0_i32_0 : i32, i32
  }
  func.func @transform_9(%arg0: i32) -> (i32, i32) {
    %c0_i32 = arith.constant 0 : i32
    %c0_i32_0 = arith.constant 0 : i32
    %c0_i32_1 = arith.constant 0 : i32
    return %c0_i32, %c0_i32_0 : i32, i32
  }
  func.func @transform_10(%arg0: i32) -> (i32, i32) {
    %c0_i32 = arith.constant 0 : i32
    %c0_i32_0 = arith.constant 0 : i32
    %c0_i32_1 = arith.constant 0 : i32
    return %c0_i32, %c0_i32_0 : i32, i32
  }
  func.func @transform_11(%arg0: i32) -> (i32, i32) {
    %c0_i32 = arith.constant 0 : i32
    %c0_i32_0 = arith.constant 0 : i32
    %c0_i32_1 = arith.constant 0 : i32
    return %c0_i32, %c0_i32_0 : i32, i32
  }
  func.func @transform_12(%arg0: i32) -> (i32, i32) {
    %c0_i32 = arith.constant 0 : i32
    %c0_i32_0 = arith.constant 0 : i32
    %c0_i32_1 = arith.constant 0 : i32
    return %c0_i32, %c0_i32_0 : i32, i32
  }
  func.func @transform_13(%arg0: i32) -> (i32, i32, i32) {
    %c0_i32 = arith.constant 0 : i32
    %c0_i32_0 = arith.constant 0 : i32
    %c0_i32_1 = arith.constant 0 : i32
    return %arg0, %c0_i32, %c0_i32_0 : i32, i32, i32
  }
}

</mosaic_0001>

<bundles_post_ra>
// kernel: transformer_forward.5
= control target key start
LH: loop header
LB: loop body
LE: loop exit
PB: predicated region body
PF: predicated region fallthrough
CT: control target
= control target key end

     0   :  { %vm42_vm0 = vcmask 261120   ;;  %s121_s1 = inlined_call_operand.vmem [shape: bf16[32,128], index: 1, kind: input, shape index: {}]   ;;  %s122_s2 = inlined_call_operand.vmem [shape: f32[1,128], index: 2, kind: input, shape index: {}]   ;;  %s123_s0 = inlined_call_operand.vmem [shape: bf16[16,32], index: 0, kind: input, shape index: {}]   ;;  %s124_s3 = inlined_call_operand.vmem [shape: f32[16,128], index: 3, kind: output, shape index: {}]  }
   0x1   :  { %v81_v0 = vld [vmem:[%s121_s1 + $0x8] sm:$0xff]  ;;  %v80_v1 = vld [vmem:[%s121_s1] sm:$0xff] }
   0x2   :  { %52 = vmatpush.bf16.msra.mxu0 %v81_v0  ;;  %v79_v2 = vld [vmem:[%s123_s0] sm:$0xff] }
   0x3   :  { %v82_v3 = vld [vmem:[%s122_s2] ss:$0 sm:$0xff] }
   0x6   :  { %53 = vmatpush.bf16.msra.mxu0 %v80_v1 }
   0x9   :  { %78 = vmatmul.msk.bf16.vlgmr.msra.gmra.mxu0 %vm42_vm0, %v79_v2 }
  0x86   :  { %v55_v4 = vpop.f32.mrf.mxu0 }
  0x87   :  { %v56_v5 = vadd.f32 %v82_v3, %v55_v4 }
  0x89   :  { %60 = vst [vmem:[%s124_s3] sm:$0xff] %v56_v5 }
  0x8e   :  { %v57_v6 = vpop.f32.mrf.mxu0 }
  0x8f   :  { %v58_v7 = vadd.f32 %v82_v3, %v57_v6 }
  0x91   :  { %61 = vst [vmem:[%s124_s3 + $0x8] sm:$0xff] %v58_v7 }

// kernel: transformer_forward.4
= control target key start
LH: loop header
LB: loop body
LE: loop exit
PB: predicated region body
PF: predicated region fallthrough
CT: control target
= control target key end

     0   :  { %s1218_s25 = smov 0   ;;  %s1342_s0 = inlined_call_operand.vmem [shape: bf16[2,8,32], index: 0, kind: input, shape index: {}]   ;;  %s1343_s1 = inlined_call_operand.vmem [shape: bf16[32,96], index: 1, kind: input, shape index: {}]   ;;  %s1344_s2 = inlined_call_operand.vmem [shape: f32[1,96], index: 2, kind: input, shape index: {}]   ;;  %s1345_s3 = inlined_call_operand.vmem [shape: bf16[32,32], index: 3, kind: input, shape index: {}]   ;;  %s1346_s4 = inlined_call_operand.vmem [shape: f32[1,32], index: 4, kind: input, shape index: {}]   ;;  %s1347_s5 = inlined_call_operand.vmem [shape: f32[1,32], index: 5, kind: input, shape index: {}]   ;;  %s1348_s6 = inlined_call_operand.vmem [shape: f32[1,32], index: 6, kind: input, shape index: {}]   ;;  %s1349_s7 = inlined_call_operand.vmem [shape: bf16[32,64], index: 7, kind: input, shape index: {}]   ;;  %s1350_s8 = inlined_call_operand.vmem [shape: f32[1,64], index: 8, kind: input, shape index: {}]   ;;  %s1351_s9 = inlined_call_operand.vmem [shape: bf16[64,32], index: 9, kind: input, shape index: {}]   ;;  %s1352_s10 = inlined_call_operand.vmem [shape: f32[1,32], index: 10, kind: input, shape index: {}]   ;;  %s1353_s11 = inlined_call_operand.vmem [shape: f32[1,32], index: 11, kind: input, shape index: {}]   ;;  %s1354_s12 = inlined_call_operand.vmem [shape: f32[1,32], index: 12, kind: input, shape index: {}]   ;;  %s1355_s13 = inlined_call_operand.vmem [shape: bf16[2,8,32], index: 13, kind: output, shape index: {}]  }
   0x1 LB: > { %s999_s26 = sadd.s32 4294967295, %s1130_s25   ;;  %p1003_p0 = scmp.ge.s32.totalorder %s1130_s25, 1  ;;  %s1130_s25 = sphi %s1218_s25, %s23_s25  }
   0x2   : > { %p386_p1 = scmp.lt.s32.totalorder %s1130_s25, 3 }
   0x4   : > { %p387_p2 = pnand %p1003_p0, %p386_p1 }
   0x5   : > { %p428_p3 = scmp.lt.s32.totalorder (!%p387_p2), %s999_s26, 1  ;;  %s1132_s20 = smov (!%p387_p2), 96  }
   0x6   : > { %390 = sbr.rel (%p387_p2) target bundleno = 1899 (0x76b), region = 72  ;;  %s1133_s21 = smov (!%p387_p2), 104  }
   0x7   : > { %s1134_s22 = smov (!%p387_p2), 120   ;;  %s1135_s23 = smov (!%p387_p2), 88  }
   0x8   : > { %s1136_s24 = smov (!%p387_p2), 80   ;;  %s1137_s27 = smov (!%p387_p2), 72  }
   0x9   : > { %s1138_s28 = smov (!%p387_p2), 112   ;;  %s1140_s29 = smov (!%p387_p2), 64  }
   0xa   : > { %s1141_s30 = smov (!%p387_p2), 40   ;;  %s1142_s15 = smov (!%p387_p2), 56  }
   0xb   : > { %v1061_v0 = vld [vmem:[%s1343_s1 + $0x8] sm:$0xff]  ;;  %v1060_v1 = vld [vmem:[%s1343_s1] sm:$0xff]  ;;  %s1357_s26 = smov (!%p428_p3, %s999_s26), 1  ;;  %vm459_vm0 = vcmask 261120   ;;  %vm490_vm1 = vcmask 64512   ;;  %v476_v25 = vlaneseq  ;;  %v1139_v28 = vmov -inf  }
   0xc   : > { %469 = vmatpush.bf16.msra.mxu0 %v1061_v0  ;;  %s1004_s14 = sshll.u32 %s1357_s26, 2  ;;  %v1094_v3 = vld [vmem:[%s1344_s2] ss:$0 sm:$0xff]  ;;  %vm527_vm3 = vcmask 1043456   ;;  %s1143_s16 = smov 48   ;;  %vm737_vm4 = vcmask 130048  }
   0xd   : > { %s431_s17 = scalar_lea.vmem %s1342_s0, %s1004_s14  ;;  %v477_v26 = vshrl.u32 %v476_v25, 7  ;;  %v479_v27 = vand.u32 127, %v476_v25  ;;  %s1145_s18 = smov 16   ;;  %vm740_vm5 = vcmask 195584   ;;  %vm893_vm10 = vcmask 523264  }
   0xe   : > { %v1240_v2 = vld [vmem:[%s431_s17] sm:$0xf]  ;;  %s1144_s17 = smov 8   ;;  %s1146_s19 = smov 24   ;;  %vm944_vm14 = vcmask 257024  }
   0xf   : > { %vm480_vm2 = vcmp.ge.s32.totalorder %v477_v26, %v479_v27 }
  0x10   : > { %470 = vmatpush.bf16.msra.mxu0 %v1060_v1  ;;  %v481_v29 = vsel %vm480_vm2, 0.0, %v1139_v28 }
  0x13   : > { %1014 = vmatmul.msk.bf16.vlgmr.msra.gmra.mxu0 %vm459_vm0, %v1240_v2 }
  0x90   : > { %v472_v4 = vpop.f32.mrf.mxu0 }
  0x91   : > { %v473_v5 = vadd.f32 %v1094_v3, %v472_v4 }
  0x93   : > { %v482_v6 = vmul.f32 0.35355338, %v473_v5  ;;  %v484_v7 = vpack.c.bf16 %v473_v5, %v473_v5 }
  0x95   : > { %v483_v8 = vpack.c.bf16 %v482_v6, %v482_v6  ;;  %v486_v9 = vunpack.c.l.b16 %v484_v7 }
  0x97   : > { %v1247_v10 = vpack.c.b16 %v486_v9, %v486_v9  ;;  %v546_v11 = vunpack.c.l.b16 %v483_v8 }
  0x98   : > { %v474_v12 = vpop.f32.mrf.mxu0 }
  0x99   : > { %488 = vrot.lane.b32.xlu0 %v1247_v10, %s1132_s20  ;;  %v547_v13 = vpack.c.b16 %v546_v11, %v546_v11 }
  0x9b   : > { %662 = vrot.lane.b32.xlu2 %v547_v13, %s1133_s21  ;;  %548 = vrot.lane.b32.xlu1 %v547_v13, %s1134_s22 }
  0xa1   : > { %550 = vrot.lane.b32.xlu0 %v1247_v10, %s1135_s23 }
  0xa3   : > { %607 = vrot.lane.b32.xlu2 %v1247_v10, %s1136_s24  ;;  %664 = vrot.lane.b32.xlu1 %v1247_v10, %s1137_s27  ;;  %s435_s24 = scalar_lea.vmem %s1355_s13, %s1004_s14 }
  0xa9   : > { %605 = vrot.lane.b32.xlu0 %v547_v13, %s1138_s28 }
  0xf5   : > { %v663_v14 = vpop.permute.xlu2 %662 }
  0xfd   : > { %v608_v15 = vpop.permute.xlu2 %607 }
  0xfe   : > { %v613_v16 = vsel %vm490_vm1, %v608_v15, 0 }
  0xff   : > { %622 = vmatpush.bf16.xpose.msrb.mxu0 %v613_v16 }
 0x10b   : > { %v489_v17 = vpop.permute.xlu0 %488 }
 0x10c   : > { %v495_v18 = vsel %vm490_vm1, %v489_v17, 0 }
 0x10d   : > { %504 = vmatpush.bf16.xpose.msra.mxu1 %v495_v18  ;;  %v549_v19 = vpop.permute.xlu1 %548 }
 0x113   : > { %v551_v20 = vpop.permute.xlu0 %550 }
 0x114   : > { %1015 = vmatmul.msk.bf16.vlgmr.msra.gmra.mxu1 %vm490_vm1, %v483_v8  ;;  %v556_v21 = vsel %vm490_vm1, %v551_v20, 0 }
 0x115   : > { %565 = vmatpush.bf16.xpose.msra.mxu3 %v556_v21  ;;  %v665_v22 = vpop.permute.xlu1 %664 }
 0x116   : > { %v670_v23 = vsel %vm490_vm1, %v665_v22, 0 }
 0x11b   : > { %v606_v24 = vpop.permute.xlu0 %605 }
 0x11c   : > { %1017 = vmatmul.msk.bf16.vlgmr.msra.gmra.mxu3 %vm490_vm1, %v549_v19  ;;  %1019 = vmatmul.msk.bf16.vlgmr.msrb.gmra.mxu0 %vm490_vm1, %v606_v24 }
 0x11d   : > { %679 = vmatpush.bf16.xpose.msrb.mxu3 %v670_v23 }
 0x12c   : > { %1021 = vmatmul.msk.bf16.vlgmr.msrb.gmra.mxu3 %vm490_vm1, %v663_v14 }
 0x191   : > { %v506_v30 = vpop.f32.mrf.mxu1 }
 0x192   : > { %v507_v31 = vadd.f32 %v506_v30, %v481_v29 }
 0x194   : > { %v510_v32 = vsel %vm490_vm1, %v507_v31, -inf }
 0x195   : > { %511 = vmax.xlane.f32.xlu1 %v510_v32 }
 0x199   : > { %v508_v33 = vpop.f32.mrf.mxu1  ;;  %v624_v34 = vpop.f32.mrf.mxu0 }
 0x19a   : > { %v625_v39 = vadd.f32 %v624_v34, %v481_v29 }
 0x19c   : > { %v628_v41 = vsel %vm490_vm1, %v625_v39, -inf }
 0x19f   : > { %v567_v35 = vpop.f32.mrf.mxu3 }
 0x1a0   : > { %v568_v36 = vadd.f32 %v567_v35, %v481_v29 }
 0x1a1   : > { %v626_v37 = vpop.f32.mrf.mxu0 }
 0x1a2   : > { %v571_v38 = vsel %vm490_vm1, %v568_v36, -inf }
 0x1a3   : > { %572 = vmax.xlane.f32.xlu2 %v571_v38 }
 0x1a7   : > { %v569_v40 = vpop.f32.mrf.mxu3 }
 0x1ab   : > { %629 = vmax.xlane.f32.xlu2 %v628_v41 }
 0x1af   : > { %v681_v42 = vpop.f32.mrf.mxu3 }
 0x1b0   : > { %v682_v43 = vadd.f32 %v681_v42, %v481_v29 }
 0x1b2   : > { %v685_v44 = vsel %vm490_vm1, %v682_v43, -inf }
 0x1b3   : > { %686 = vmax.xlane.f32.xlu0 %v685_v44  ;;  %v1063_v44 = vld [vmem:[%s1345_s3 + $0x8] sm:$0xff] }
 0x1b4   : > { %771 = vmatpush.bf16.msra.mxu0 %v1063_v44 }
 0x1b7   : > { %v683_v45 = vpop.f32.mrf.mxu3 }
 0x1b8   : > { %v1062_v45 = vld [vmem:[%s1345_s3] sm:$0xff] }
 0x1b9   : > { %772 = vmatpush.bf16.msra.mxu0 %v1062_v45 }
 0x1c3   : > { %522 = vrot.lane.b32.xlu2 %v1247_v10, %s1140_s29 }
 0x1cb   : > { %697 = vrot.lane.b32.xlu2 %v1247_v10, %s1141_s30 }
 0x208   : > { %v512_v46 = vpop.xlane.xlu1 %511 }
 0x209   : > { %v513_v47 = vsub.f32 %v507_v31, %v512_v46 }
 0x20b   : > { %v514_v48 = vmul.f32 1.442695, %v513_v47 }
 0x20d   : > { %1102 = vpow2.f32 %v514_v48 }
 0x213   : > { %v1103_v49 = vpop.eup %1102 }
 0x214   : > { %v516_v50 = vsel %vm490_vm1, %v1103_v49, 0.0 }
 0x215   : > { %517 = vadd.xlane.f32.xlu1 %v516_v50 }
 0x216   : > { %v573_v51 = vpop.xlane.xlu2 %572 }
 0x217   : > { %v574_v54 = vsub.f32 %v568_v36, %v573_v51 }
 0x219   : > { %v575_v56 = vmul.f32 1.442695, %v574_v54  ;;  %v438_v54 = vunpack.c.l.bf16 %v1240_v2 }
 0x21e   : > { %v630_v52 = vpop.xlane.xlu2 %629 }
 0x21f   : > { %v631_v53 = vsub.f32 %v625_v39, %v630_v52 }
 0x221   : > { %v632_v55 = vmul.f32 1.442695, %v631_v53  ;;  %v1095_v53 = vld [vmem:[%s1346_s4] ss:$0 sm:$0xff] }
 0x223   : > { %1104 = vpow2.f32 %v632_v55 }
 0x224   : > { %1106 = vpow2.f32 %v575_v56 }
 0x226   : > { %v523_v57 = vpop.permute.xlu2 %522  ;;  %v687_v58 = vpop.xlane.xlu0 %686 }
 0x227   : > { %v529_v59 = vsel %vm527_vm3, %v523_v57, 0  ;;  %v688_v61 = vsub.f32 %v682_v43, %v687_v58 }
 0x228   : > { %538 = vmatpush.bf16.msra.mxu2 %v529_v59 }
 0x229   : > { %v1105_v60 = vpop.eup %1104  ;;  %v689_v63 = vmul.f32 1.442695, %v688_v61 }
 0x22a   : > { %v634_v62 = vsel %vm490_vm1, %v1105_v60, 0.0  ;;  %v1107_v0 = vpop.eup %1106 }
 0x22b   : > { %635 = vadd.xlane.f32.xlu0 %v634_v62  ;;  %1108 = vpow2.f32 %v689_v63  ;;  %v577_v1 = vsel %vm490_vm1, %v1107_v0, 0.0 }
 0x22e   : > { %583 = vrot.lane.b32.xlu1 %v1247_v10, %s1142_s15  ;;  %v698_v11 = vpop.permute.xlu2 %697 }
 0x22f   : > { %v703_v14 = vsel %vm527_vm3, %v698_v11, 0  ;;  %v1069_v11 = vld [vmem:[%s1351_s9 + $0x18] sm:$0xff] }
 0x230   : > { %901 = vmatpush.bf16.msra.mxu3 %v1069_v11 }
 0x231   : > { %v1109_v3 = vpop.eup %1108 }
 0x232   : > { %v691_v4 = vsel %vm490_vm1, %v1109_v3, 0.0 }
 0x233   : > { %578 = vadd.xlane.f32.xlu0 %v577_v1 }
 0x23b   : > { %692 = vadd.xlane.f32.xlu0 %v691_v4 }
 0x24f   : > { %640 = vrot.lane.b32.xlu0 %v1247_v10, %s1143_s16 }
 0x288   : > { %v518_v5 = vpop.xlane.xlu1 %517 }
 0x289   : > { %1110 = vrcp.f32 %v518_v5 }
 0x28f   : > { %v1111_v6 = vpop.eup %1110 }
 0x290   : > { %v520_v7 = vmul.f32 %v1111_v6, %v1103_v49 }
 0x292   : > { %v521_v8 = vpack.c.bf16 %v520_v7, %v520_v7 }
 0x294   : > { %1016 = vmatmul.msk.bf16.vlgmr.msra.gmra.mxu2 %vm490_vm1, %v521_v8  ;;  %v1065_v8 = vld [vmem:[%s1349_s7 + $0x8] sm:$0xff] }
 0x29e   : > { %v636_v9 = vpop.xlane.xlu0 %635 }
 0x2a0   : > { %v584_v12 = vpop.permute.xlu1 %583 }
 0x2a1   : > { %v589_v13 = vsel %vm527_vm3, %v584_v12, 0 }
 0x2a2   : > { %598 = vmatpush.bf16.msrb.mxu2 %v589_v13 }
 0x2a6   : > { %712 = vmatpush.bf16.msra.mxu2 %v703_v14  ;;  %v579_v15 = vpop.xlane.xlu0 %578  ;;  %v1068_v14 = vld [vmem:[%s1351_s9 + $0x10] sm:$0xff] }
 0x2a7   : > { %1112 = vrcp.f32 %v579_v15  ;;  %902 = vmatpush.bf16.msra.mxu3 %v1068_v14 }
 0x2ad   : > { %v1113_v16 = vpop.eup %1112 }
 0x2ae   : > { %v581_v10 = vmul.f32 %v1113_v16, %v1107_v0  ;;  %v693_v17 = vpop.xlane.xlu0 %692  ;;  %v1067_v16 = vld [vmem:[%s1351_s9 + $0x8] sm:$0xff] }
 0x2af   : > { %1114 = vrcp.f32 %v693_v17  ;;  %903 = vmatpush.bf16.msra.mxu3 %v1067_v16 }
 0x2b0   : > { %v582_v18 = vpack.c.bf16 %v581_v10, %v581_v10  ;;  %1116 = vrcp.f32 %v636_v9  ;;  %v1064_v9 = vld [vmem:[%s1349_s7] sm:$0xff] }
 0x2b2   : > { %1018 = vmatmul.msk.bf16.vlgmr.msrb.gmra.mxu2 %vm490_vm1, %v582_v18 }
 0x2b5   : > { %v1115_v19 = vpop.eup %1114 }
 0x2b6   : > { %v695_v20 = vmul.f32 %v1115_v19, %v1109_v3  ;;  %v1117_v21 = vpop.eup %1116 }
 0x2b7   : > { %v638_v22 = vmul.f32 %v1117_v21, %v1105_v60  ;;  %v1147_v60 = vmov 32.0  }
 0x2b8   : > { %v696_v23 = vpack.c.bf16 %v695_v20, %v695_v20  ;;  %1118 = vrcp.f32 %v1147_v60 }
 0x2b9   : > { %v639_v26 = vpack.c.bf16 %v638_v22, %v638_v22  ;;  %v1096_v22 = vld [vmem:[%s1347_s5] ss:$0 sm:$0xff] }
 0x2be   : > { %v1119_v61 = vpop.eup %1118 }
 0x2bf   : > { %v783_v62 = vmul.f32 32.0, %v1119_v61  ;;  %vm787_vm6 = vweird.f32 %v1119_v61 }
 0x2c1   : > { %v641_v24 = vpop.permute.xlu0 %640  ;;  %v784_v63 = vsub.f32 1.0, %v783_v62 }
 0x2c2   : > { %1022 = vmatmul.msk.bf16.vlgmr.msra.gmra.mxu2 %vm490_vm1, %v696_v23  ;;  %v646_v25 = vsel %vm527_vm3, %v641_v24, 0  ;;  %v1097_v24 = vld [vmem:[%s1348_s6] ss:$0 sm:$0xff] }
 0x2c3   : > { %655 = vmatpush.bf16.msrb.mxu1 %v646_v25  ;;  %v785_v0 = vmul.f32 %v1119_v61, %v784_v63 }
 0x2c5   : > { %v786_v1 = vadd.f32 %v1119_v61, %v785_v0 }
 0x2c6   : > { %1020 = vmatmul.msk.bf16.vlgmr.msrb.gmra.mxu1 %vm490_vm1, %v639_v26 }
 0x2c7   : > { %v788_v3 = vsel %vm787_vm6, %v1119_v61, %v786_v1  ;;  %848 = vmatpush.bf16.msra.mxu1 %v1065_v8 }
 0x2cb   : > { %849 = vmatpush.bf16.msra.mxu1 %v1064_v9 }
 0x317   : > { %v540_v27 = vpop.f32.mrf.mxu2 }
 0x318   : > { %v544_v47 = vpack.c.bf16 %v540_v27, %v540_v27 }
 0x31f   : > { %v542_v28 = vpop.f32.mrf.mxu2 }
 0x335   : > { %v600_v29 = vpop.f32.mrf.mxu2 }
 0x336   : > { %v604_v30 = vpack.c.bf16 %v600_v29, %v600_v29  ;;  %v1066_v29 = vld [vmem:[%s1351_s9] sm:$0xff] }
 0x337   : > { %904 = vmatpush.bf16.msra.mxu3 %v1066_v29 }
 0x338   : > { %v720_v31 = vunpack.c.l.b16 %v604_v30  ;;  %v1098_v30 = vld [vmem:[%s1350_s8] ss:$0 sm:$0xff] }
 0x33a   : > { %v721_v32 = vpack.c.b16 %v720_v31, %v720_v31 }
 0x33c   : > { %722 = vrot.lane.b32.xlu1 %v721_v32, %s1144_s17 }
 0x33d   : > { %v602_v33 = vpop.f32.mrf.mxu2 }
 0x343   : > { %v657_v34 = vpop.f32.mrf.mxu1 }
 0x344   : > { %v661_v35 = vpack.c.bf16 %v657_v34, %v657_v34 }
 0x345   : > { %v714_v36 = vpop.f32.mrf.mxu2 }
 0x346   : > { %v725_v37 = vunpack.c.l.b16 %v661_v35  ;;  %v718_v38 = vpack.c.bf16 %v714_v36, %v714_v36  ;;  %v1099_v36 = vld [vmem:[%s1352_s10] ss:$0 sm:$0xff] }
 0x348   : > { %v726_v39 = vpack.c.b16 %v725_v37, %v725_v37  ;;  %v730_v40 = vunpack.c.l.b16 %v718_v38 }
 0x34a   : > { %v731_v41 = vpack.c.b16 %v730_v40, %v730_v40  ;;  %727 = vrot.lane.b32.xlu2 %v726_v39, %s1145_s18 }
 0x34b   : > { %v659_v42 = vpop.f32.mrf.mxu1 }
 0x34c   : > { %732 = vrot.lane.b32.xlu1 %v731_v41, %s1146_s19 }
 0x34d   : > { %v716_v43 = vpop.f32.mrf.mxu2 }
 0x3a4   : > { %v728_v49 = vpop.permute.xlu2 %727 }
 0x3ae   : > { %v723_v46 = vpop.permute.xlu1 %722 }
 0x3af   : > { %v736_v48 = vsel %vm490_vm1, %v544_v47, %v723_v46 }
 0x3b0   : > { %v739_v50 = vsel %vm737_vm4, %v736_v48, %v728_v49 }
 0x3be   : > { %v733_v51 = vpop.permute.xlu1 %732 }
 0x3bf   : > { %v742_v52 = vsel %vm740_vm5, %v739_v50, %v733_v51 }
 0x3c0   : > { %1031 = vmatmul.msk.bf16.vlgmr.msra.gmra.mxu0 %vm459_vm0, %v742_v52 }
 0x43d   : > { %v774_v55 = vpop.f32.mrf.mxu0 }
 0x43e   : > { %v775_v56 = vadd.f32 %v1095_v53, %v774_v55 }
 0x440   : > { %v778_v57 = vadd.f32 %v775_v56, %v438_v54  ;;  %v1100_v56 = vld [vmem:[%s1353_s11] ss:$0 sm:$0xff] }
 0x442   : > { %v779_v58 = vsel %vm459_vm0, %v778_v57, 0.0 }
 0x443   : > { %780 = vadd.xlane.f32.xlu2 %v779_v58  ;;  %v1101_v58 = vld [vmem:[%s1354_s12] ss:$0 sm:$0xff] }
 0x445   : > { %v776_v59 = vpop.f32.mrf.mxu0 }
 0x4b6   : > { %v781_v4 = vpop.xlane.xlu2 %780 }
 0x4b7   : > { %v789_v5 = vmul.f32 %v788_v3, %v781_v4 }
 0x4b9   : > { %v790_v6 = vsub.f32 %v778_v57, %v789_v5 }
 0x4bb   : > { %v791_v2 = vmul.f32 %v790_v6, %v790_v6 }
 0x4bd   : > { %v792_v7 = vsel %vm459_vm0, %v791_v2, 0.0 }
 0x4be   : > { %793 = vadd.xlane.f32.xlu1 %v792_v7 }
 0x531   : > { %v794_v12 = vpop.xlane.xlu1 %793 }
 0x532   : > { %v795_v13 = vmul.f32 %v794_v12, %v788_v3 }
 0x534   : > { %v796_v15 = vadd.f32 1e-05, %v795_v13 }
 0x536   : > { %1120 = vrsqrt.f32 %v796_v15  ;;  %vm803_vm8 = vweird.f32 %v796_v15 }
 0x53c   : > { %v1121_v10 = vpop.eup %1120 }
 0x53d   : > { %v798_v17 = vmul.f32 %v1121_v10, %v796_v15  ;;  %vm804_vm7 = vweird.f32 %v1121_v10 }
 0x53e   : > { %vm805_vm9 = vmor %vm803_vm8, %vm804_vm7 }
 0x53f   : > { %v799_v18 = vmul.f32 %v1121_v10, %v798_v17 }
 0x541   : > { %v800_v19 = vmul.f32 0.5, %v799_v18 }
 0x543   : > { %v801_v20 = vsub.f32 1.5, %v800_v19 }
 0x545   : > { %v802_v21 = vmul.f32 %v1121_v10, %v801_v20 }
 0x547   : > { %v806_v23 = vsel %vm805_vm9, %v1121_v10, %v802_v21 }
 0x548   : > { %v807_v25 = vmul.f32 %v806_v23, %v790_v6 }
 0x54a   : > { %v812_v26 = vmul.f32 %v1096_v22, %v807_v25 }
 0x54c   : > { %v817_v27 = vadd.f32 %v1097_v24, %v812_v26 }
 0x54e   : > { %v818_v28 = vpack.c.bf16 %v817_v27, %v817_v27 }
 0x550   : > { %1040 = vmatmul.msk.bf16.vlgmr.msra.gmra.mxu1 %vm459_vm0, %v818_v28 }
 0x5cd   : > { %v851_v31 = vpop.f32.mrf.mxu1 }
 0x5ce   : > { %v852_v32 = vadd.f32 %v1098_v30, %v851_v31 }
 0x5d0   : > { %v855_v33 = vmax.f32 %v852_v32, 0.0 }
 0x5d2   : > { %v856_v34 = vpack.c.bf16 %v855_v33, %v855_v33 }
 0x5d4   : > { %1057 = vmatmul.msk.bf16.vlgmr.msra.gmra.mxu3 %vm893_vm10, %v856_v34 }
 0x5d5   : > { %v853_v35 = vpop.f32.mrf.mxu1 }
 0x657   : > { %v906_v37 = vpop.f32.mrf.mxu3 }
 0x658   : > { %v907_v38 = vadd.f32 %v1099_v36, %v906_v37 }
 0x65a   : > { %v910_v39 = vadd.f32 %v907_v38, %v817_v27 }
 0x65c   : > { %v911_v40 = vsel %vm459_vm0, %v910_v39, 0.0 }
 0x65d   : > { %912 = vadd.xlane.f32.xlu0 %v911_v40 }
 0x65f   : > { %v908_v41 = vpop.f32.mrf.mxu3 }
 0x6d0   : > { %v913_v42 = vpop.xlane.xlu0 %912 }
 0x6d1   : > { %v914_v43 = vmul.f32 %v913_v42, %v788_v3 }
 0x6d3   : > { %v915_v44 = vsub.f32 %v910_v39, %v914_v43 }
 0x6d5   : > { %v916_v45 = vmul.f32 %v915_v44, %v915_v44 }
 0x6d7   : > { %v917_v46 = vsel %vm459_vm0, %v916_v45, 0.0 }
 0x6d8   : > { %918 = vadd.xlane.f32.xlu2 %v917_v46 }
 0x74b   : > { %v919_v47 = vpop.xlane.xlu2 %918 }
 0x74c   : > { %v920_v48 = vmul.f32 %v919_v47, %v788_v3 }
 0x74e   : > { %v921_v49 = vadd.f32 1e-05, %v920_v48 }
 0x750   : > { %1122 = vrsqrt.f32 %v921_v49  ;;  %vm928_vm12 = vweird.f32 %v921_v49 }
 0x756   : > { %v1123_v50 = vpop.eup %1122 }
 0x757   : > { %v923_v51 = vmul.f32 %v1123_v50, %v921_v49  ;;  %vm929_vm11 = vweird.f32 %v1123_v50 }
 0x758   : > { %vm930_vm13 = vmor %vm928_vm12, %vm929_vm11 }
 0x759   : > { %v924_v52 = vmul.f32 %v1123_v50, %v923_v51 }
 0x75b   : > { %v925_v53 = vmul.f32 0.5, %v924_v52 }
 0x75d   : > { %v926_v54 = vsub.f32 1.5, %v925_v53 }
 0x75f   : > { %v927_v55 = vmul.f32 %v1123_v50, %v926_v54 }
 0x761   : > { %v931_v57 = vsel %vm930_vm13, %v1123_v50, %v927_v55 }
 0x762   : > { %v932_v59 = vmul.f32 %v931_v57, %v915_v44 }
 0x764   : > { %v937_v60 = vmul.f32 %v1100_v56, %v932_v59 }
 0x766   : > { %v942_v61 = vadd.f32 %v1101_v58, %v937_v60 }
 0x768   : > { %v943_v62 = vpack.c.bf16 %v942_v61, %v942_v61 }
 0x76a   : > { %945 = vst.msk [vmem:[%s435_s24] sm:$0xf] %vm944_vm14, %v943_v62 }
 0x76b PF: > { %s23_s25 = sadd.s32 1, %s1130_s25  }
 0x76c   : > { %p20_p4 = scmp.ge.s32.totalorder %s23_s25, 4  }
 0x76e   :  { %22 = sbr.rel (!%p20_p4) target bundleno = 1 (0x1), region = 102 }

// kernel: transformer_forward.3
= control target key start
LH: loop header
LB: loop body
LE: loop exit
PB: predicated region body
PF: predicated region fallthrough
CT: control target
= control target key end

     0   :  { %s1254_s29 = smov 0   ;;  %s1382_s0 = inlined_call_operand.vmem [shape: bf16[2,8,32], index: 0, kind: input, shape index: {}]   ;;  %s1383_s1 = inlined_call_operand.vmem [shape: f32[8,32], index: 1, kind: input, shape index: {}]   ;;  %s1384_s2 = inlined_call_operand.vmem [shape: bf16[32,96], index: 2, kind: input, shape index: {}]   ;;  %s1385_s3 = inlined_call_operand.vmem [shape: f32[1,96], index: 3, kind: input, shape index: {}]   ;;  %s1386_s4 = inlined_call_operand.vmem [shape: bf16[32,32], index: 4, kind: input, shape index: {}]   ;;  %s1387_s5 = inlined_call_operand.vmem [shape: f32[1,32], index: 5, kind: input, shape index: {}]   ;;  %s1388_s6 = inlined_call_operand.vmem [shape: f32[1,32], index: 6, kind: input, shape index: {}]   ;;  %s1389_s7 = inlined_call_operand.vmem [shape: f32[1,32], index: 7, kind: input, shape index: {}]   ;;  %s1390_s8 = inlined_call_operand.vmem [shape: bf16[32,64], index: 8, kind: input, shape index: {}]   ;;  %s1391_s9 = inlined_call_operand.vmem [shape: f32[1,64], index: 9, kind: input, shape index: {}]   ;;  %s1392_s10 = inlined_call_operand.vmem [shape: bf16[64,32], index: 10, kind: input, shape index: {}]   ;;  %s1393_s11 = inlined_call_operand.vmem [shape: f32[1,32], index: 11, kind: input, shape index: {}]   ;;  %s1394_s12 = inlined_call_operand.vmem [shape: f32[1,32], index: 12, kind: input, shape index: {}]   ;;  %s1395_s13 = inlined_call_operand.vmem [shape: f32[1,32], index: 13, kind: input, shape index: {}]   ;;  %s1396_s14 = inlined_call_operand.vmem [shape: bf16[2,8,32], index: 14, kind: output, shape index: {}]  }
   0x1 LB: > { %s1030_s30 = sadd.s32 4294967295, %s1161_s29   ;;  %p1034_p0 = scmp.ge.s32.totalorder %s1161_s29, 1  ;;  %s1161_s29 = sphi %s1254_s29, %s24_s29  }
   0x2   : > { %p411_p1 = scmp.lt.s32.totalorder %s1161_s29, 3 }
   0x4   : > { %p412_p2 = pnand %p1034_p0, %p411_p1 }
   0x5   : > { %p455_p3 = scmp.lt.s32.totalorder (!%p412_p2), %s1030_s30, 1  ;;  %s1163_s27 = smov (!%p412_p2), 96  }
   0x6   : > { %415 = sbr.rel (%p412_p2) target bundleno = 1903 (0x76f), region = 76  ;;  %s1164_s28 = smov (!%p412_p2), 104  }
   0x7   : > { %s1165_s15 = smov (!%p412_p2), 120   ;;  %s1166_s16 = smov (!%p412_p2), 88  }
   0x8   : > { %s1167_s17 = smov (!%p412_p2), 80   ;;  %s1168_s18 = smov (!%p412_p2), 72  }
   0x9   : > { %s1169_s20 = smov (!%p412_p2), 112   ;;  %s1171_s21 = smov (!%p412_p2), 64  }
   0xa   : > { %s1173_s23 = smov (!%p412_p2), 56   ;;  %s1174_s24 = smov (!%p412_p2), 48  }
   0xb   : > { %v1092_v0 = vld [vmem:[%s1384_s2 + $0x8] sm:$0xff]  ;;  %v1091_v1 = vld [vmem:[%s1384_s2] sm:$0xff]  ;;  %s1398_s30 = smov (!%p455_p3, %s1030_s30), 1  ;;  %vm490_vm0 = vcmask 261120   ;;  %vm521_vm1 = vcmask 64512   ;;  %v507_v30 = vlaneseq  ;;  %v1170_v33 = vmov -inf  }
   0xc   : > { %500 = vmatpush.bf16.msra.mxu0 %v1092_v0  ;;  %s1035_s19 = sshll.u32 %s1398_s30, 2  ;;  %v467_v4 = vld [vmem:[%s1383_s1] sm:$0xff]  ;;  %vm558_vm3 = vcmask 1043456   ;;  %s1175_s25 = smov 8   ;;  %vm768_vm4 = vcmask 130048   ;;  %vm771_vm5 = vcmask 195584  }
   0xd   : > { %s458_s22 = scalar_lea.vmem %s1382_s0, %s1035_s19  ;;  %v1125_v8 = vld [vmem:[%s1385_s3] ss:$0 sm:$0xff]  ;;  %v508_v31 = vshrl.u32 %v507_v30, 7  ;;  %v510_v32 = vand.u32 127, %v507_v30  ;;  %s1176_s26 = smov 16   ;;  %vm924_vm10 = vcmask 523264  }
   0xe   : > { %v464_v2 = vld [vmem:[%s458_s22] sm:$0xf]  ;;  %s1172_s22 = smov 40   ;;  %vm975_vm14 = vcmask 257024  }
   0xf   : > { %v465_v3 = vunpack.c.l.bf16 %v464_v2  ;;  %vm511_vm2 = vcmp.ge.s32.totalorder %v508_v31, %v510_v32 }
  0x10   : > { %501 = vmatpush.bf16.msra.mxu0 %v1091_v1  ;;  %v512_v34 = vsel %vm511_vm2, 0.0, %v1170_v33 }
  0x11   : > { %v466_v5 = vmul.f32 5.656854, %v465_v3 }
  0x13   : > { %v1279_v6 = vadd.f32 %v467_v4, %v466_v5 }
  0x15   : > { %v469_v7 = vpack.c.bf16 %v1279_v6, %v1279_v6 }
  0x17   : > { %1045 = vmatmul.msk.bf16.vlgmr.msra.gmra.mxu0 %vm490_vm0, %v469_v7 }
  0x94   : > { %v503_v9 = vpop.f32.mrf.mxu0 }
  0x95   : > { %v504_v10 = vadd.f32 %v1125_v8, %v503_v9 }
  0x97   : > { %v513_v11 = vmul.f32 0.35355338, %v504_v10  ;;  %v515_v12 = vpack.c.bf16 %v504_v10, %v504_v10 }
  0x99   : > { %v514_v13 = vpack.c.bf16 %v513_v11, %v513_v11  ;;  %v517_v14 = vunpack.c.l.b16 %v515_v12 }
  0x9b   : > { %v1287_v15 = vpack.c.b16 %v517_v14, %v517_v14  ;;  %v577_v16 = vunpack.c.l.b16 %v514_v13 }
  0x9c   : > { %v505_v17 = vpop.f32.mrf.mxu0 }
  0x9d   : > { %519 = vrot.lane.b32.xlu0 %v1287_v15, %s1163_s27  ;;  %v578_v18 = vpack.c.b16 %v577_v16, %v577_v16  ;;  %s1177_s27 = smov 24  }
  0x9f   : > { %693 = vrot.lane.b32.xlu2 %v578_v18, %s1164_s28  ;;  %579 = vrot.lane.b32.xlu1 %v578_v18, %s1165_s15 }
  0xa5   : > { %581 = vrot.lane.b32.xlu0 %v1287_v15, %s1166_s16 }
  0xa7   : > { %638 = vrot.lane.b32.xlu2 %v1287_v15, %s1167_s17  ;;  %695 = vrot.lane.b32.xlu1 %v1287_v15, %s1168_s18 }
  0xad   : > { %636 = vrot.lane.b32.xlu0 %v578_v18, %s1169_s20 }
  0xf9   : > { %v694_v19 = vpop.permute.xlu2 %693 }
 0x101   : > { %v639_v20 = vpop.permute.xlu2 %638 }
 0x102   : > { %v644_v21 = vsel %vm521_vm1, %v639_v20, 0 }
 0x103   : > { %653 = vmatpush.bf16.xpose.msrb.mxu0 %v644_v21 }
 0x10f   : > { %v520_v22 = vpop.permute.xlu0 %519 }
 0x110   : > { %v526_v23 = vsel %vm521_vm1, %v520_v22, 0 }
 0x111   : > { %535 = vmatpush.bf16.xpose.msra.mxu1 %v526_v23  ;;  %v580_v24 = vpop.permute.xlu1 %579 }
 0x117   : > { %v582_v25 = vpop.permute.xlu0 %581 }
 0x118   : > { %1046 = vmatmul.msk.bf16.vlgmr.msra.gmra.mxu1 %vm521_vm1, %v514_v13  ;;  %v587_v26 = vsel %vm521_vm1, %v582_v25, 0 }
 0x119   : > { %596 = vmatpush.bf16.xpose.msra.mxu3 %v587_v26  ;;  %v696_v27 = vpop.permute.xlu1 %695 }
 0x11a   : > { %v701_v28 = vsel %vm521_vm1, %v696_v27, 0 }
 0x11f   : > { %v637_v29 = vpop.permute.xlu0 %636 }
 0x120   : > { %1048 = vmatmul.msk.bf16.vlgmr.msra.gmra.mxu3 %vm521_vm1, %v580_v24  ;;  %1050 = vmatmul.msk.bf16.vlgmr.msrb.gmra.mxu0 %vm521_vm1, %v637_v29 }
 0x121   : > { %710 = vmatpush.bf16.xpose.msrb.mxu3 %v701_v28 }
 0x130   : > { %1052 = vmatmul.msk.bf16.vlgmr.msrb.gmra.mxu3 %vm521_vm1, %v694_v19 }
 0x195   : > { %v537_v35 = vpop.f32.mrf.mxu1 }
 0x196   : > { %v538_v36 = vadd.f32 %v537_v35, %v512_v34 }
 0x198   : > { %v541_v37 = vsel %vm521_vm1, %v538_v36, -inf }
 0x199   : > { %542 = vmax.xlane.f32.xlu1 %v541_v37 }
 0x19d   : > { %v539_v38 = vpop.f32.mrf.mxu1  ;;  %v655_v39 = vpop.f32.mrf.mxu0 }
 0x19e   : > { %v656_v44 = vadd.f32 %v655_v39, %v512_v34 }
 0x1a0   : > { %v659_v46 = vsel %vm521_vm1, %v656_v44, -inf }
 0x1a3   : > { %v598_v40 = vpop.f32.mrf.mxu3 }
 0x1a4   : > { %v599_v41 = vadd.f32 %v598_v40, %v512_v34 }
 0x1a5   : > { %v657_v42 = vpop.f32.mrf.mxu0 }
 0x1a6   : > { %v602_v43 = vsel %vm521_vm1, %v599_v41, -inf }
 0x1a7   : > { %603 = vmax.xlane.f32.xlu2 %v602_v43 }
 0x1ab   : > { %v600_v45 = vpop.f32.mrf.mxu3 }
 0x1af   : > { %660 = vmax.xlane.f32.xlu2 %v659_v46 }
 0x1b3   : > { %v712_v47 = vpop.f32.mrf.mxu3 }
 0x1b4   : > { %v713_v48 = vadd.f32 %v712_v47, %v512_v34 }
 0x1b6   : > { %v716_v49 = vsel %vm521_vm1, %v713_v48, -inf }
 0x1b7   : > { %717 = vmax.xlane.f32.xlu0 %v716_v49  ;;  %v1094_v49 = vld [vmem:[%s1386_s4 + $0x8] sm:$0xff] }
 0x1b8   : > { %802 = vmatpush.bf16.msra.mxu0 %v1094_v49 }
 0x1bb   : > { %v714_v50 = vpop.f32.mrf.mxu3 }
 0x1bc   : > { %v1093_v50 = vld [vmem:[%s1386_s4] sm:$0xff] }
 0x1bd   : > { %803 = vmatpush.bf16.msra.mxu0 %v1093_v50 }
 0x1c7   : > { %553 = vrot.lane.b32.xlu2 %v1287_v15, %s1171_s21  ;;  %s462_s21 = scalar_lea.vmem %s1396_s14, %s1035_s19 }
 0x1cf   : > { %728 = vrot.lane.b32.xlu2 %v1287_v15, %s1172_s22 }
 0x20c   : > { %v543_v51 = vpop.xlane.xlu1 %542 }
 0x20d   : > { %v544_v52 = vsub.f32 %v538_v36, %v543_v51 }
 0x20f   : > { %v545_v53 = vmul.f32 1.442695, %v544_v52 }
 0x211   : > { %1133 = vpow2.f32 %v545_v53 }
 0x217   : > { %v1134_v54 = vpop.eup %1133 }
 0x218   : > { %v547_v55 = vsel %vm521_vm1, %v1134_v54, 0.0 }
 0x219   : > { %548 = vadd.xlane.f32.xlu1 %v547_v55 }
 0x21a   : > { %v604_v56 = vpop.xlane.xlu2 %603 }
 0x21b   : > { %v605_v59 = vsub.f32 %v599_v41, %v604_v56 }
 0x21d   : > { %v606_v61 = vmul.f32 1.442695, %v605_v59 }
 0x222   : > { %v661_v57 = vpop.xlane.xlu2 %660 }
 0x223   : > { %v662_v58 = vsub.f32 %v656_v44, %v661_v57 }
 0x225   : > { %v663_v60 = vmul.f32 1.442695, %v662_v58  ;;  %v1126_v58 = vld [vmem:[%s1387_s5] ss:$0 sm:$0xff] }
 0x227   : > { %1135 = vpow2.f32 %v663_v60 }
 0x228   : > { %1137 = vpow2.f32 %v606_v61 }
 0x22a   : > { %v554_v62 = vpop.permute.xlu2 %553  ;;  %v718_v63 = vpop.xlane.xlu0 %717 }
 0x22b   : > { %v560_v0 = vsel %vm558_vm3, %v554_v62, 0  ;;  %v719_v2 = vsub.f32 %v713_v48, %v718_v63 }
 0x22c   : > { %569 = vmatpush.bf16.msra.mxu2 %v560_v0  ;;  %v1178_v0 = vmov 32.0  }
 0x22d   : > { %v1136_v1 = vpop.eup %1135  ;;  %v720_v4 = vmul.f32 1.442695, %v719_v2 }
 0x22e   : > { %v665_v3 = vsel %vm521_vm1, %v1136_v1, 0.0  ;;  %v1138_v5 = vpop.eup %1137 }
 0x22f   : > { %666 = vadd.xlane.f32.xlu0 %v665_v3  ;;  %1139 = vpow2.f32 %v720_v4  ;;  %v608_v7 = vsel %vm521_vm1, %v1138_v5, 0.0 }
 0x232   : > { %614 = vrot.lane.b32.xlu1 %v1287_v15, %s1173_s23  ;;  %v729_v16 = vpop.permute.xlu2 %728 }
 0x233   : > { %v734_v19 = vsel %vm558_vm3, %v729_v16, 0 }
 0x235   : > { %v1140_v8 = vpop.eup %1139 }
 0x236   : > { %v722_v9 = vsel %vm521_vm1, %v1140_v8, 0.0 }
 0x237   : > { %609 = vadd.xlane.f32.xlu0 %v608_v7 }
 0x23f   : > { %723 = vadd.xlane.f32.xlu0 %v722_v9 }
 0x253   : > { %671 = vrot.lane.b32.xlu0 %v1287_v15, %s1174_s24 }
 0x28c   : > { %v549_v10 = vpop.xlane.xlu1 %548 }
 0x28d   : > { %1141 = vrcp.f32 %v549_v10 }
 0x293   : > { %v1142_v11 = vpop.eup %1141 }
 0x294   : > { %v551_v12 = vmul.f32 %v1142_v11, %v1134_v54 }
 0x296   : > { %v552_v13 = vpack.c.bf16 %v551_v12, %v551_v12 }
 0x298   : > { %1047 = vmatmul.msk.bf16.vlgmr.msra.gmra.mxu2 %vm521_vm1, %v552_v13  ;;  %v1095_v13 = vld [vmem:[%s1390_s8] sm:$0xff] }
 0x2a2   : > { %v667_v14 = vpop.xlane.xlu0 %666 }
 0x2a4   : > { %v615_v17 = vpop.permute.xlu1 %614 }
 0x2a5   : > { %v620_v18 = vsel %vm558_vm3, %v615_v17, 0 }
 0x2a6   : > { %629 = vmatpush.bf16.msrb.mxu2 %v620_v18  ;;  %v1099_v18 = vld [vmem:[%s1392_s10 + $0x10] sm:$0xff] }
 0x2aa   : > { %743 = vmatpush.bf16.msra.mxu2 %v734_v19  ;;  %v610_v20 = vpop.xlane.xlu0 %609 }
 0x2ab   : > { %1143 = vrcp.f32 %v610_v20  ;;  %v1098_v20 = vld [vmem:[%s1392_s10 + $0x8] sm:$0xff] }
 0x2b1   : > { %v1144_v21 = vpop.eup %1143 }
 0x2b2   : > { %v612_v15 = vmul.f32 %v1144_v21, %v1138_v5  ;;  %v724_v22 = vpop.xlane.xlu0 %723 }
 0x2b3   : > { %1145 = vrcp.f32 %v724_v22 }
 0x2b4   : > { %v613_v23 = vpack.c.bf16 %v612_v15, %v612_v15  ;;  %1147 = vrcp.f32 %v667_v14  ;;  %v1100_v14 = vld [vmem:[%s1392_s10 + $0x18] sm:$0xff] }
 0x2b5   : > { %1149 = vrcp.f32 %v1178_v0  ;;  %932 = vmatpush.bf16.msra.mxu3 %v1100_v14 }
 0x2b6   : > { %1049 = vmatmul.msk.bf16.vlgmr.msrb.gmra.mxu2 %vm521_vm1, %v613_v23 }
 0x2b9   : > { %v1146_v24 = vpop.eup %1145  ;;  %933 = vmatpush.bf16.msra.mxu3 %v1099_v18 }
 0x2ba   : > { %v726_v25 = vmul.f32 %v1146_v24, %v1140_v8  ;;  %v1148_v26 = vpop.eup %1147 }
 0x2bb   : > { %v669_v27 = vmul.f32 %v1148_v26, %v1136_v1  ;;  %v1150_v1 = vpop.eup %1149  ;;  %v1127_v26 = vld [vmem:[%s1388_s6] ss:$0 sm:$0xff] }
 0x2bc   : > { %v727_v28 = vpack.c.bf16 %v726_v25, %v726_v25  ;;  %v814_v2 = vmul.f32 32.0, %v1150_v1  ;;  %vm818_vm6 = vweird.f32 %v1150_v1 }
 0x2bd   : > { %v670_v31 = vpack.c.bf16 %v669_v27, %v669_v27  ;;  %934 = vmatpush.bf16.msra.mxu3 %v1098_v20 }
 0x2be   : > { %v815_v3 = vsub.f32 1.0, %v814_v2 }
 0x2c0   : > { %v816_v4 = vmul.f32 %v1150_v1, %v815_v3 }
 0x2c2   : > { %v817_v5 = vadd.f32 %v1150_v1, %v816_v4 }
 0x2c4   : > { %v819_v7 = vsel %vm818_vm6, %v1150_v1, %v817_v5 }
 0x2c5   : > { %v672_v29 = vpop.permute.xlu0 %671 }
 0x2c6   : > { %1053 = vmatmul.msk.bf16.vlgmr.msra.gmra.mxu2 %vm521_vm1, %v727_v28  ;;  %v677_v30 = vsel %vm558_vm3, %v672_v29, 0  ;;  %v1128_v28 = vld [vmem:[%s1389_s7] ss:$0 sm:$0xff] }
 0x2c7   : > { %686 = vmatpush.bf16.msrb.mxu1 %v677_v30 }
 0x2ca   : > { %1051 = vmatmul.msk.bf16.vlgmr.msrb.gmra.mxu1 %vm521_vm1, %v670_v31 }
 0x31b   : > { %v571_v32 = vpop.f32.mrf.mxu2 }
 0x31c   : > { %v575_v52 = vpack.c.bf16 %v571_v32, %v571_v32 }
 0x323   : > { %v573_v33 = vpop.f32.mrf.mxu2 }
 0x324   : > { %v1097_v33 = vld [vmem:[%s1392_s10] sm:$0xff] }
 0x325   : > { %935 = vmatpush.bf16.msra.mxu3 %v1097_v33 }
 0x339   : > { %v631_v34 = vpop.f32.mrf.mxu2 }
 0x33a   : > { %v635_v35 = vpack.c.bf16 %v631_v34, %v631_v34  ;;  %v1129_v34 = vld [vmem:[%s1391_s9] ss:$0 sm:$0xff] }
 0x33c   : > { %v751_v36 = vunpack.c.l.b16 %v635_v35 }
 0x33e   : > { %v752_v37 = vpack.c.b16 %v751_v36, %v751_v36 }
 0x340   : > { %753 = vrot.lane.b32.xlu1 %v752_v37, %s1175_s25 }
 0x341   : > { %v633_v38 = vpop.f32.mrf.mxu2 }
 0x347   : > { %v688_v39 = vpop.f32.mrf.mxu1 }
 0x348   : > { %v692_v40 = vpack.c.bf16 %v688_v39, %v688_v39 }
 0x349   : > { %v745_v41 = vpop.f32.mrf.mxu2 }
 0x34a   : > { %v756_v42 = vunpack.c.l.b16 %v692_v40  ;;  %v749_v43 = vpack.c.bf16 %v745_v41, %v745_v41  ;;  %v1130_v40 = vld [vmem:[%s1393_s11] ss:$0 sm:$0xff] }
 0x34c   : > { %v757_v44 = vpack.c.b16 %v756_v42, %v756_v42  ;;  %v761_v45 = vunpack.c.l.b16 %v749_v43 }
 0x34e   : > { %v762_v46 = vpack.c.b16 %v761_v45, %v761_v45  ;;  %758 = vrot.lane.b32.xlu2 %v757_v44, %s1176_s26 }
 0x34f   : > { %v690_v47 = vpop.f32.mrf.mxu1 }
 0x350   : > { %763 = vrot.lane.b32.xlu1 %v762_v46, %s1177_s27 }
 0x351   : > { %v747_v48 = vpop.f32.mrf.mxu2 }
 0x3a8   : > { %v759_v54 = vpop.permute.xlu2 %758 }
 0x3b2   : > { %v754_v51 = vpop.permute.xlu1 %753 }
 0x3b3   : > { %v767_v53 = vsel %vm521_vm1, %v575_v52, %v754_v51 }
 0x3b4   : > { %v770_v55 = vsel %vm768_vm4, %v767_v53, %v759_v54 }
 0x3c2   : > { %v764_v56 = vpop.permute.xlu1 %763 }
 0x3c3   : > { %v773_v57 = vsel %vm771_vm5, %v770_v55, %v764_v56 }
 0x3c4   : > { %1062 = vmatmul.msk.bf16.vlgmr.msra.gmra.mxu0 %vm490_vm0, %v773_v57 }
 0x441   : > { %v805_v59 = vpop.f32.mrf.mxu0 }
 0x442   : > { %v806_v60 = vadd.f32 %v1126_v58, %v805_v59 }
 0x444   : > { %v809_v61 = vadd.f32 %v806_v60, %v1279_v6  ;;  %v1096_v6 = vld [vmem:[%s1390_s8 + $0x8] sm:$0xff]  ;;  %v1131_v60 = vld [vmem:[%s1394_s12] ss:$0 sm:$0xff] }
 0x445   : > { %879 = vmatpush.bf16.msra.mxu1 %v1096_v6 }
 0x446   : > { %v810_v62 = vsel %vm490_vm0, %v809_v61, 0.0 }
 0x447   : > { %811 = vadd.xlane.f32.xlu2 %v810_v62  ;;  %v1132_v62 = vld [vmem:[%s1395_s13] ss:$0 sm:$0xff] }
 0x449   : > { %v807_v63 = vpop.f32.mrf.mxu0  ;;  %880 = vmatpush.bf16.msra.mxu1 %v1095_v13 }
 0x4ba   : > { %v812_v8 = vpop.xlane.xlu2 %811 }
 0x4bb   : > { %v820_v9 = vmul.f32 %v819_v7, %v812_v8 }
 0x4bd   : > { %v821_v10 = vsub.f32 %v809_v61, %v820_v9 }
 0x4bf   : > { %v822_v11 = vmul.f32 %v821_v10, %v821_v10 }
 0x4c1   : > { %v823_v12 = vsel %vm490_vm0, %v822_v11, 0.0 }
 0x4c2   : > { %824 = vadd.xlane.f32.xlu1 %v823_v12 }
 0x535   : > { %v825_v16 = vpop.xlane.xlu1 %824 }
 0x536   : > { %v826_v17 = vmul.f32 %v825_v16, %v819_v7 }
 0x538   : > { %v827_v19 = vadd.f32 1e-05, %v826_v17 }
 0x53a   : > { %1151 = vrsqrt.f32 %v827_v19  ;;  %vm834_vm8 = vweird.f32 %v827_v19 }
 0x540   : > { %v1152_v21 = vpop.eup %1151 }
 0x541   : > { %v829_v15 = vmul.f32 %v1152_v21, %v827_v19  ;;  %vm835_vm7 = vweird.f32 %v1152_v21 }
 0x542   : > { %vm836_vm9 = vmor %vm834_vm8, %vm835_vm7 }
 0x543   : > { %v830_v22 = vmul.f32 %v1152_v21, %v829_v15 }
 0x545   : > { %v831_v23 = vmul.f32 0.5, %v830_v22 }
 0x547   : > { %v832_v24 = vsub.f32 1.5, %v831_v23 }
 0x549   : > { %v833_v25 = vmul.f32 %v1152_v21, %v832_v24 }
 0x54b   : > { %v837_v27 = vsel %vm836_vm9, %v1152_v21, %v833_v25 }
 0x54c   : > { %v838_v29 = vmul.f32 %v837_v27, %v821_v10 }
 0x54e   : > { %v843_v30 = vmul.f32 %v1127_v26, %v838_v29 }
 0x550   : > { %v848_v31 = vadd.f32 %v1128_v28, %v843_v30 }
 0x552   : > { %v849_v32 = vpack.c.bf16 %v848_v31, %v848_v31 }
 0x554   : > { %1071 = vmatmul.msk.bf16.vlgmr.msra.gmra.mxu1 %vm490_vm0, %v849_v32 }
 0x5d1   : > { %v882_v35 = vpop.f32.mrf.mxu1 }
 0x5d2   : > { %v883_v36 = vadd.f32 %v1129_v34, %v882_v35 }
 0x5d4   : > { %v886_v37 = vmax.f32 %v883_v36, 0.0 }
 0x5d6   : > { %v887_v38 = vpack.c.bf16 %v886_v37, %v886_v37 }
 0x5d8   : > { %1088 = vmatmul.msk.bf16.vlgmr.msra.gmra.mxu3 %vm924_vm10, %v887_v38 }
 0x5d9   : > { %v884_v39 = vpop.f32.mrf.mxu1 }
 0x65b   : > { %v937_v41 = vpop.f32.mrf.mxu3 }
 0x65c   : > { %v938_v42 = vadd.f32 %v1130_v40, %v937_v41 }
 0x65e   : > { %v941_v43 = vadd.f32 %v938_v42, %v848_v31 }
 0x660   : > { %v942_v44 = vsel %vm490_vm0, %v941_v43, 0.0 }
 0x661   : > { %943 = vadd.xlane.f32.xlu0 %v942_v44 }
 0x663   : > { %v939_v45 = vpop.f32.mrf.mxu3 }
 0x6d4   : > { %v944_v46 = vpop.xlane.xlu0 %943 }
 0x6d5   : > { %v945_v47 = vmul.f32 %v944_v46, %v819_v7 }
 0x6d7   : > { %v946_v48 = vsub.f32 %v941_v43, %v945_v47 }
 0x6d9   : > { %v947_v49 = vmul.f32 %v946_v48, %v946_v48 }
 0x6db   : > { %v948_v50 = vsel %vm490_vm0, %v947_v49, 0.0 }
 0x6dc   : > { %949 = vadd.xlane.f32.xlu2 %v948_v50 }
 0x74f   : > { %v950_v51 = vpop.xlane.xlu2 %949 }
 0x750   : > { %v951_v52 = vmul.f32 %v950_v51, %v819_v7 }
 0x752   : > { %v952_v53 = vadd.f32 1e-05, %v951_v52 }
 0x754   : > { %1153 = vrsqrt.f32 %v952_v53  ;;  %vm959_vm12 = vweird.f32 %v952_v53 }
 0x75a   : > { %v1154_v54 = vpop.eup %1153 }
 0x75b   : > { %v954_v55 = vmul.f32 %v1154_v54, %v952_v53  ;;  %vm960_vm11 = vweird.f32 %v1154_v54 }
 0x75c   : > { %vm961_vm13 = vmor %vm959_vm12, %vm960_vm11 }
 0x75d   : > { %v955_v56 = vmul.f32 %v1154_v54, %v954_v55 }
 0x75f   : > { %v956_v57 = vmul.f32 0.5, %v955_v56 }
 0x761   : > { %v957_v58 = vsub.f32 1.5, %v956_v57 }
 0x763   : > { %v958_v59 = vmul.f32 %v1154_v54, %v957_v58 }
 0x765   : > { %v962_v61 = vsel %vm961_vm13, %v1154_v54, %v958_v59 }
 0x766   : > { %v963_v63 = vmul.f32 %v962_v61, %v946_v48 }
 0x768   : > { %v968_v0 = vmul.f32 %v1131_v60, %v963_v63 }
 0x76a   : > { %v973_v1 = vadd.f32 %v1132_v62, %v968_v0 }
 0x76c   : > { %v974_v2 = vpack.c.bf16 %v973_v1, %v973_v1 }
 0x76e   : > { %976 = vst.msk [vmem:[%s462_s21] sm:$0xf] %vm975_vm14, %v974_v2 }
 0x76f PF: > { %s24_s29 = sadd.s32 1, %s1161_s29  }
 0x770   : > { %p21_p4 = scmp.ge.s32.totalorder %s24_s29, 4  }
 0x772   :  { %23 = sbr.rel (!%p21_p4) target bundleno = 1 (0x1), region = 106 }

</bundles_post_ra>
